<compile_context>
chip_gen: v7x
topology: tpu7x:2x2x1
jax: 0.10.0
libtpu: 0.0.40
codegen_flags: <defaults>
</compile_context>

<pallas_src>
import functools

import jax
import jax.numpy as jnp
from jax.experimental import pallas as pl
from jax.experimental.pallas import tpu as pltpu


def _dsconv_kernel(x_ref, top_ref, bot_ref, wdw_ref, b1_ref, wpw_ref, b2_ref,
                   o_ref, *, TH, W, Cin, Cout_p, CH, dw_dtype):
    # x_ref  : (1, TH, W+2, Cin)  f32   row tile (W zero-padded, no H halo)
    # top_ref: (1, 1,  W+2, Cin)  f32   row just above the tile (clamped idx)
    # bot_ref: (1, 1,  W+2, Cin)  f32   row just below the tile (clamped idx)
    # wdw_ref: (3, 3, Cin)   dw_dtype   depthwise weights, BN1 scale folded in
    # b1_ref : (1, Cin)           f32   folded BN1 bias
    # wpw_ref: (Cin, Cout_p)      bf16  pointwise weights, BN2 scale folded in
    # b2_ref : (1, Cout_p)        f32   folded BN2 bias (zero in padded chans)
    # o_ref  : (1, TH, W, Cout_p) f32
    t = pl.program_id(1)
    nT = pl.num_programs(1)

    # H-halo rows come from clamped block indices of the same input array;
    # gate them to zero at the image top/bottom so the 3x3 conv sees zero
    # padding (no wrapper gather, no inflated HBM copy of the input).
    top = top_ref[0, 0] * jnp.where(t > 0, 1.0, 0.0)          # (W+2, Cin)
    bot = bot_ref[0, 0] * jnp.where(t < nT - 1, 1.0, 0.0)     # (W+2, Cin)
    xp = jnp.concatenate([top[None], x_ref[0], bot[None]], axis=0)
    xp = xp.astype(dw_dtype)                                  # (TH+2, W+2, Cin)

    wdw = wdw_ref[...]                                        # (3, 3, Cin)
    # Hoist the three W-shifted (sublane-axis) views once, reuse for all taps.
    xs = [xp[:, dw:dw + W, :] for dw in range(3)]             # 3 x (TH+2, W, Cin)

    # Process the tile in CH-row chunks (unrolled): the depthwise MAC (VPU) of
    # chunk c+1 is independent of the pointwise matmul (MXU) + bias/ReLU of
    # chunk c, so the LLO scheduler can overlap VALU and vmatmul bundles.
    for c in range(TH // CH):
        r0 = c * CH
        # --- depthwise 3x3, stride 1 ------------------------------------
        acc = None
        for dh in range(3):
            for dw in range(3):
                term = xs[dw][r0 + dh:r0 + dh + CH] * wdw[dh, dw]
                acc = term if acc is None else acc + term     # (CH, W, Cin)
        # --- BN1 bias + ReLU (scale folded into wdw); bias add in f32 ----
        y = jnp.maximum(acc + b1_ref[0], 0.0)                 # (CH, W, Cin) f32
        # --- pointwise 1x1 on the MXU: bf16 inputs, f32 accumulation -----
        y2 = jnp.dot(y.reshape(CH * W, Cin).astype(jnp.bfloat16), wpw_ref[...],
                     preferred_element_type=jnp.float32)      # (CH*W, Cout_p)
        # --- BN2 bias + ReLU (scale folded into wpw) ----------------------
        y2 = jnp.maximum(y2 + b2_ref[...], 0.0)
        # lane-dense store: last dim Cout_p is a multiple of 128
        o_ref[0, r0:r0 + CH] = y2.reshape(CH, W, Cout_p)


def _choose_row_tile(N, H, W, Cin, Cout_p, dw_bytes, budget_bytes):
    """Largest divisor of H whose working set (double-buffered DMA blocks,
    weights and in-kernel temporaries) fits the VMEM budget, preferring
    choices that give >= 4 grid steps (pipelining) and an even step count
    (balanced 2-TensorCore megacore split on v7x)."""
    Wp = W + 2

    def tile_bytes(th):
        ch = max(th // 2, 1)
        in_blk = 2 * th * Wp * Cin * 4                 # main input, x2 buffers
        halo = 2 * 2 * Wp * Cin * 4                    # top/bottom halo rows
        out_blk = 2 * th * W * Cout_p * 4              # output, x2 buffers
        wts = 2 * (9 * Cin * dw_bytes + Cin * Cout_p * 2 + Cin * 4 + Cout_p * 4)
        xp_copy = (th + 2) * Wp * Cin * dw_bytes       # concat result
        shifts = 3 * (th + 2) * W * Cin * dw_bytes     # hoisted W-shift copies
        interm = ch * W * (Cin * (4 + 2 + dw_bytes)    # acc/y f32 + bf16 copy
                           + 2 * Cout_p * 4)           # matmul result + ReLU
        return in_blk + halo + out_blk + wts + xp_copy + shifts + interm

    divs = [d for d in range(1, H + 1) if H % d == 0]
    fitting = [d for d in divs if tile_bytes(d) <= budget_bytes]
    if not fitting:
        raise ValueError(
            f"_DSConv row tile does not fit the VMEM budget ({budget_bytes} B) "
            f"even at TH=1; shrink W/Cin/Cout or add a W-tiling axis.")

    def key(d):
        steps = N * (H // d)
        return (steps >= 4, steps % 2 == 0, d)

    return max(fitting, key=key)


def dsconv_forward(x_nchw, w_dw, bn1, w_pw, bn2, eps=1e-5):
    """x_nchw: (N, Cin, H, W) float32.  Returns (N, Cout, H, W) float32."""
    N, Cin, H, W = x_nchw.shape
    Cout = w_pw.shape[0]
    Cout_p = ((Cout + 127) // 128) * 128               # lane-dense output stores

    # Depthwise MAC dtype: bf16 where the VPU has a packed-bf16 path (v6e/v7x),
    # f32 on v5e and older (no bf16 VALU).
    kind = jax.devices()[0].device_kind.lower()
    dw_dtype = jnp.bfloat16 if ("v6" in kind or "v7" in kind) else jnp.float32
    dw_bytes = jnp.dtype(dw_dtype).itemsize

    # Per-generation VMEM budget (v7x: 64 MiB physical, v5e/v6e: 128 MiB).
    try:
        vmem_cap = int(pltpu.get_tpu_info().vmem_capacity_bytes)
    except Exception:
        vmem_cap = 64 * 1024 * 1024                    # conservative fallback
    vmem_limit = min(int(0.75 * vmem_cap), 100 * 1024 * 1024)
    # ~22% headroom for Mosaic internal scratch when choosing the row tile.
    TH = _choose_row_tile(N, H, W, Cin, Cout_p, dw_bytes, int(0.78 * vmem_limit))
    nT = H // TH
    n_chunks = 4 if (TH % 4 == 0 and TH >= 32) else (2 if (TH % 2 == 0 and TH >= 8) else 1)
    CH = TH // n_chunks

    # --- fold BatchNorm (inference form) into the conv weights --------------
    g1, bta1, m1, v1 = bn1
    g2, bta2, m2, v2 = bn2
    inv1 = g1 / jnp.sqrt(v1 + eps)                                   # (Cin,)
    inv2 = g2 / jnp.sqrt(v2 + eps)                                   # (Cout,)
    wdw = (jnp.transpose(w_dw[:, 0, :, :], (1, 2, 0)) * inv1).astype(dw_dtype)
    b1 = (bta1 - m1 * inv1).reshape(1, Cin)
    wpw = jnp.transpose(w_pw[:, :, 0, 0], (1, 0)) * inv2             # (Cin,Cout)
    b2 = (bta2 - m2 * inv2).reshape(1, Cout)
    # zero-pad Cout -> Cout_p (padded channels stay exactly zero, stripped below)
    wpw = jnp.pad(wpw, ((0, 0), (0, Cout_p - Cout))).astype(jnp.bfloat16)
    b2 = jnp.pad(b2, ((0, 0), (0, Cout_p - Cout)))

    # --- layout glue (NCHW PyTorch interface): transpose + width-only pad ----
    # No H pad, no halo gather, no row re-tiling: the overlapping (TH+2)-row
    # windows are read directly from x via three Blocked views below.
    x = jnp.transpose(x_nchw, (0, 2, 3, 1))                          # (N,H,W,Cin)
    x = jnp.pad(x, ((0, 0), (0, 0), (1, 1), (0, 0)))                 # (N,H,W+2,Cin)

    kern = functools.partial(_dsconv_kernel, TH=TH, W=W, Cin=Cin,
                             Cout_p=Cout_p, CH=CH, dw_dtype=dw_dtype)

    out = pl.pallas_call(
        kern,
        out_shape=jax.ShapeDtypeStruct((N, H, W, Cout_p), jnp.float32),
        grid=(N, nT),
        in_specs=[
            # main (non-overlapping) row tile
            pl.BlockSpec((1, TH, W + 2, Cin), lambda n, t: (n, t, 0, 0)),
            # halo row above (block size 1 on H => block idx == row idx);
            # clamped at the image edge, gated to zero inside the kernel
            pl.BlockSpec((1, 1, W + 2, Cin),
                         lambda n, t: (n, jnp.maximum(t * TH - 1, 0), 0, 0)),
            # halo row below
            pl.BlockSpec((1, 1, W + 2, Cin),
                         lambda n, t: (n, jnp.minimum(t * TH + TH, H - 1), 0, 0)),
            pl.BlockSpec((3, 3, Cin), lambda n, t: (0, 0, 0)),
            pl.BlockSpec((1, Cin), lambda n, t: (0, 0)),
            pl.BlockSpec((Cin, Cout_p), lambda n, t: (0, 0)),
            pl.BlockSpec((1, Cout_p), lambda n, t: (0, 0)),
        ],
        out_specs=pl.BlockSpec((1, TH, W, Cout_p), lambda n, t: (n, t, 0, 0)),
        compiler_params=pltpu.CompilerParams(
            dimension_semantics=("parallel", "parallel"),
            vmem_limit_bytes=vmem_limit),
    )(x, x, x, wdw, b1, wpw, b2)

    out = out[..., :Cout]                                            # strip pad
    return jnp.transpose(out, (0, 3, 1, 2))                          # NCHW


def _reference(x_nchw, w_dw, bn1, w_pw, bn2, eps=1e-5):
    """Pure-JAX f32 reference (lax convs) for a correctness check."""
    N, Cin, H, W = x_nchw.shape
    Cout = w_pw.shape[0]
    x = jnp.transpose(x_nchw, (0, 2, 3, 1))
    wdw = jnp.transpose(w_dw[:, 0, :, :], (1, 2, 0)).reshape(3, 3, 1, Cin)
    y = jax.lax.conv_general_dilated(
        x, wdw, (1, 1), ((1, 1), (1, 1)),
        dimension_numbers=("NHWC", "HWIO", "NHWC"),
        feature_group_count=Cin)
    g1, bta1, m1, v1 = bn1
    y = jnp.maximum((y - m1) / jnp.sqrt(v1 + eps) * g1 + bta1, 0.0)
    wpw = jnp.transpose(w_pw[:, :, 0, 0], (1, 0)).reshape(1, 1, Cin, Cout)
    y = jax.lax.conv_general_dilated(
        y, wpw, (1, 1), "VALID",
        dimension_numbers=("NHWC", "HWIO", "NHWC"))
    g2, bta2, m2, v2 = bn2
    y = jnp.maximum((y - m2) / jnp.sqrt(v2 + eps) * g2 + bta2, 0.0)
    return jnp.transpose(y, (0, 3, 1, 2))


if __name__ == "__main__":
    N, Cin, Cout, H, W = 2, 4, 8, 16, 16

    key = jax.random.PRNGKey(0)
    k = jax.random.split(key, 9)
    x = jax.random.normal(k[0], (N, Cin, H, W), jnp.float32)

    # Conv weights (PyTorch shapes): depthwise (Cin,1,3,3), pointwise (Cout,Cin,1,1)
    w_dw = jax.random.normal(k[1], (Cin, 1, 3, 3), jnp.float32) * 0.3
    w_pw = jax.random.normal(k[2], (Cout, Cin, 1, 1), jnp.float32) * 0.3

    # BatchNorm params (inference): gamma, beta, running_mean, running_var
    bn1 = (1.0 + 0.1 * jax.random.normal(k[3], (Cin,), jnp.float32),
           0.1 * jax.random.normal(k[4], (Cin,), jnp.float32),
           0.1 * jax.random.normal(k[5], (Cin,), jnp.float32),
           jnp.abs(jax.random.normal(k[6], (Cin,), jnp.float32)) + 0.5)
    bn2 = (1.0 + 0.1 * jax.random.normal(k[7], (Cout,), jnp.float32),
           0.1 * jax.random.normal(k[8], (Cout,), jnp.float32),
           jnp.zeros((Cout,), jnp.float32),
           jnp.ones((Cout,), jnp.float32))

    fwd = jax.jit(dsconv_forward)
    out = jax.block_until_ready(fwd(x, w_dw, bn1, w_pw, bn2))

    ref = _reference(x, w_dw, bn1, w_pw, bn2)
    assert out.shape == (N, Cout, H, W)
    # Tolerance loosened vs. the pure-f32 reference: the pointwise matmul uses
    # bf16 MXU inputs (f32 accumulation) on every generation, and the depthwise
    # MAC runs in bf16 on v6e/v7x -- an intentional inference precision change.
    max_err = jnp.max(jnp.abs(out - ref))
    assert jnp.allclose(out, ref, atol=1e-1, rtol=5e-2), f"max err {max_err}"

    print("KERNEL_OK")
</pallas_src>

<mosaic_0001>
module attributes {stable_mosaic.version = 11 : i64} {
  func.func @_dsconv_kernel(%arg0: i32, %arg1: i32, %arg2: memref<1x8x18x4xf32, #tpu.memory_space<vmem>>, %arg3: memref<1x1x18x4xf32, #tpu.memory_space<vmem>>, %arg4: memref<1x1x18x4xf32, #tpu.memory_space<vmem>>, %arg5: memref<3x3x4xf32, #tpu.memory_space<vmem>>, %arg6: memref<1x4xf32, #tpu.memory_space<vmem>>, %arg7: memref<4x128xbf16, #tpu.memory_space<vmem>>, %arg8: memref<1x128xf32, #tpu.memory_space<vmem>>, %arg9: memref<1x8x16x128xf32, #tpu.memory_space<vmem>>) attributes {dimension_semantics = [#tpu.dimension_semantics<parallel>, #tpu.dimension_semantics<parallel>], iteration_bounds = array<i64: 2, 2>, scalar_prefetch = 0 : i64, scratch_operands = 0 : i64, tpu.core_type = #tpu.core_type<tc>, window_params = [{transform_indices = @transform_0, window_bounds = array<i64: 1, 8, 18, 4>}, {transform_indices = @transform_1, window_bounds = array<i64: 1, 1, 18, 4>}, {transform_indices = @transform_2, window_bounds = array<i64: 1, 1, 18, 4>}, {pipeline_mode = #tpu.pipeline_mode<synchronous>, transform_indices = @transform_3, window_bounds = array<i64: 3, 3, 4>}, {pipeline_mode = #tpu.pipeline_mode<synchronous>, transform_indices = @transform_4, window_bounds = array<i64: 1, 4>}, {pipeline_mode = #tpu.pipeline_mode<synchronous>, transform_indices = @transform_5, window_bounds = array<i64: 4, 128>}, {pipeline_mode = #tpu.pipeline_mode<synchronous>, transform_indices = @transform_6, window_bounds = array<i64: 1, 128>}, {transform_indices = @transform_7, window_bounds = array<i64: 1, 8, 16, 128>}]} {
    %c0 = arith.constant 0 : index
    %c0_0 = arith.constant 0 : index
    %c0_1 = arith.constant 0 : index
    %c0_2 = arith.constant 0 : index
    %0 = vector.load %arg3[%c0, %c0_0, %c0_1, %c0_2] : memref<1x1x18x4xf32, #tpu.memory_space<vmem>>, vector<1x1x18x4xf32>
    %1 = vector.shape_cast %0 : vector<1x1x18x4xf32> to vector<18x4xf32>
    %c0_i32 = arith.constant 0 : i32
    %2 = arith.cmpi sgt, %arg1, %c0_i32 : i32
    %cst = arith.constant 1.000000e+00 : f32
    %cst_3 = arith.constant 0.000000e+00 : f32
    %3 = arith.select %2, %cst, %cst_3 : f32
    %4 = vector.broadcast %3 : f32 to vector<18x4xf32>
    %5 = arith.mulf %1, %4 : vector<18x4xf32>
    %c0_4 = arith.constant 0 : index
    %c0_5 = arith.constant 0 : index
    %c0_6 = arith.constant 0 : index
    %c0_7 = arith.constant 0 : index
    %6 = vector.load %arg4[%c0_4, %c0_5, %c0_6, %c0_7] : memref<1x1x18x4xf32, #tpu.memory_space<vmem>>, vector<1x1x18x4xf32>
    %7 = vector.shape_cast %6 : vector<1x1x18x4xf32> to vector<18x4xf32>
    %c1_i32 = arith.constant 1 : i32
    %8 = arith.cmpi slt, %arg1, %c1_i32 : i32
    %cst_8 = arith.constant 1.000000e+00 : f32
    %cst_9 = arith.constant 0.000000e+00 : f32
    %9 = arith.select %8, %cst_8, %cst_9 : f32
    %10 = vector.broadcast %9 : f32 to vector<18x4xf32>
    %11 = arith.mulf %7, %10 : vector<18x4xf32>
    %12 = vector.shape_cast %5 : vector<18x4xf32> to vector<1x18x4xf32>
    %c0_10 = arith.constant 0 : index
    %c0_11 = arith.constant 0 : index
    %c0_12 = arith.constant 0 : index
    %c0_13 = arith.constant 0 : index
    %13 = vector.load %arg2[%c0_10, %c0_11, %c0_12, %c0_13] : memref<1x8x18x4xf32, #tpu.memory_space<vmem>>, vector<1x8x18x4xf32>
    %14 = vector.shape_cast %13 : vector<1x8x18x4xf32> to vector<8x18x4xf32>
    %15 = vector.shape_cast %11 : vector<18x4xf32> to vector<1x18x4xf32>
    %16 = tpu.concatenate %12, %14, %15 in 0 : vector<1x18x4xf32>, vector<8x18x4xf32>, vector<1x18x4xf32> -> vector<10x18x4xf32>
    %c0_14 = arith.constant 0 : index
    %c0_15 = arith.constant 0 : index
    %c0_16 = arith.constant 0 : index
    %17 = vector.load %arg5[%c0_14, %c0_15, %c0_16] : memref<3x3x4xf32, #tpu.memory_space<vmem>>, vector<3x3x4xf32>
    %18 = vector.extract_strided_slice %16 {offsets = [0, 0, 0], sizes = [10, 16, 4], strides = [1, 1, 1]} : vector<10x18x4xf32> to vector<10x16x4xf32>
    %19 = vector.extract_strided_slice %16 {offsets = [0, 1, 0], sizes = [10, 16, 4], strides = [1, 1, 1]} : vector<10x18x4xf32> to vector<10x16x4xf32>
    %20 = vector.extract_strided_slice %16 {offsets = [0, 2, 0], sizes = [10, 16, 4], strides = [1, 1, 1]} : vector<10x18x4xf32> to vector<10x16x4xf32>
    %21 = vector.extract_strided_slice %18 {offsets = [0, 0, 0], sizes = [4, 16, 4], strides = [1, 1, 1]} : vector<10x16x4xf32> to vector<4x16x4xf32>
    %22 = vector.extract_strided_slice %17 {offsets = [0, 0, 0], sizes = [1, 1, 4], strides = [1, 1, 1]} : vector<3x3x4xf32> to vector<1x1x4xf32>
    %23 = vector.shape_cast %22 : vector<1x1x4xf32> to vector<4xf32>
    %24 = vector.shape_cast %23 : vector<4xf32> to vector<1x1x4xf32>
    %25 = vector.broadcast %24 : vector<1x1x4xf32> to vector<4x16x4xf32>
    %26 = arith.mulf %21, %25 : vector<4x16x4xf32>
    %27 = vector.extract_strided_slice %19 {offsets = [0, 0, 0], sizes = [4, 16, 4], strides = [1, 1, 1]} : vector<10x16x4xf32> to vector<4x16x4xf32>
    %28 = vector.extract_strided_slice %17 {offsets = [0, 1, 0], sizes = [1, 1, 4], strides = [1, 1, 1]} : vector<3x3x4xf32> to vector<1x1x4xf32>
    %29 = vector.shape_cast %28 : vector<1x1x4xf32> to vector<4xf32>
    %30 = vector.shape_cast %29 : vector<4xf32> to vector<1x1x4xf32>
    %31 = vector.broadcast %30 : vector<1x1x4xf32> to vector<4x16x4xf32>
    %32 = arith.mulf %27, %31 : vector<4x16x4xf32>
    %33 = arith.addf %26, %32 : vector<4x16x4xf32>
    %34 = vector.extract_strided_slice %20 {offsets = [0, 0, 0], sizes = [4, 16, 4], strides = [1, 1, 1]} : vector<10x16x4xf32> to vector<4x16x4xf32>
    %35 = vector.extract_strided_slice %17 {offsets = [0, 2, 0], sizes = [1, 1, 4], strides = [1, 1, 1]} : vector<3x3x4xf32> to vector<1x1x4xf32>
    %36 = vector.shape_cast %35 : vector<1x1x4xf32> to vector<4xf32>
    %37 = vector.shape_cast %36 : vector<4xf32> to vector<1x1x4xf32>
    %38 = vector.broadcast %37 : vector<1x1x4xf32> to vector<4x16x4xf32>
    %39 = arith.mulf %34, %38 : vector<4x16x4xf32>
    %40 = arith.addf %33, %39 : vector<4x16x4xf32>
    %41 = vector.extract_strided_slice %18 {offsets = [1, 0, 0], sizes = [4, 16, 4], strides = [1, 1, 1]} : vector<10x16x4xf32> to vector<4x16x4xf32>
    %42 = vector.extract_strided_slice %17 {offsets = [1, 0, 0], sizes = [1, 1, 4], strides = [1, 1, 1]} : vector<3x3x4xf32> to vector<1x1x4xf32>
    %43 = vector.shape_cast %42 : vector<1x1x4xf32> to vector<4xf32>
    %44 = vector.shape_cast %43 : vector<4xf32> to vector<1x1x4xf32>
    %45 = vector.broadcast %44 : vector<1x1x4xf32> to vector<4x16x4xf32>
    %46 = arith.mulf %41, %45 : vector<4x16x4xf32>
    %47 = arith.addf %40, %46 : vector<4x16x4xf32>
    %48 = vector.extract_strided_slice %19 {offsets = [1, 0, 0], sizes = [4, 16, 4], strides = [1, 1, 1]} : vector<10x16x4xf32> to vector<4x16x4xf32>
    %49 = vector.extract_strided_slice %17 {offsets = [1, 1, 0], sizes = [1, 1, 4], strides = [1, 1, 1]} : vector<3x3x4xf32> to vector<1x1x4xf32>
    %50 = vector.shape_cast %49 : vector<1x1x4xf32> to vector<4xf32>
    %51 = vector.shape_cast %50 : vector<4xf32> to vector<1x1x4xf32>
    %52 = vector.broadcast %51 : vector<1x1x4xf32> to vector<4x16x4xf32>
    %53 = arith.mulf %48, %52 : vector<4x16x4xf32>
    %54 = arith.addf %47, %53 : vector<4x16x4xf32>
    %55 = vector.extract_strided_slice %20 {offsets = [1, 0, 0], sizes = [4, 16, 4], strides = [1, 1, 1]} : vector<10x16x4xf32> to vector<4x16x4xf32>
    %56 = vector.extract_strided_slice %17 {offsets = [1, 2, 0], sizes = [1, 1, 4], strides = [1, 1, 1]} : vector<3x3x4xf32> to vector<1x1x4xf32>
    %57 = vector.shape_cast %56 : vector<1x1x4xf32> to vector<4xf32>
    %58 = vector.shape_cast %57 : vector<4xf32> to vector<1x1x4xf32>
    %59 = vector.broadcast %58 : vector<1x1x4xf32> to vector<4x16x4xf32>
    %60 = arith.mulf %55, %59 : vector<4x16x4xf32>
    %61 = arith.addf %54, %60 : vector<4x16x4xf32>
    %62 = vector.extract_strided_slice %18 {offsets = [2, 0, 0], sizes = [4, 16, 4], strides = [1, 1, 1]} : vector<10x16x4xf32> to vector<4x16x4xf32>
    %63 = vector.extract_strided_slice %17 {offsets = [2, 0, 0], sizes = [1, 1, 4], strides = [1, 1, 1]} : vector<3x3x4xf32> to vector<1x1x4xf32>
    %64 = vector.shape_cast %63 : vector<1x1x4xf32> to vector<4xf32>
    %65 = vector.shape_cast %64 : vector<4xf32> to vector<1x1x4xf32>
    %66 = vector.broadcast %65 : vector<1x1x4xf32> to vector<4x16x4xf32>
    %67 = arith.mulf %62, %66 : vector<4x16x4xf32>
    %68 = arith.addf %61, %67 : vector<4x16x4xf32>
    %69 = vector.extract_strided_slice %19 {offsets = [2, 0, 0], sizes = [4, 16, 4], strides = [1, 1, 1]} : vector<10x16x4xf32> to vector<4x16x4xf32>
    %70 = vector.extract_strided_slice %17 {offsets = [2, 1, 0], sizes = [1, 1, 4], strides = [1, 1, 1]} : vector<3x3x4xf32> to vector<1x1x4xf32>
    %71 = vector.shape_cast %70 : vector<1x1x4xf32> to vector<4xf32>
    %72 = vector.shape_cast %71 : vector<4xf32> to vector<1x1x4xf32>
    %73 = vector.broadcast %72 : vector<1x1x4xf32> to vector<4x16x4xf32>
    %74 = arith.mulf %69, %73 : vector<4x16x4xf32>
    %75 = arith.addf %68, %74 : vector<4x16x4xf32>
    %76 = vector.extract_strided_slice %20 {offsets = [2, 0, 0], sizes = [4, 16, 4], strides = [1, 1, 1]} : vector<10x16x4xf32> to vector<4x16x4xf32>
    %77 = vector.extract_strided_slice %17 {offsets = [2, 2, 0], sizes = [1, 1, 4], strides = [1, 1, 1]} : vector<3x3x4xf32> to vector<1x1x4xf32>
    %78 = vector.shape_cast %77 : vector<1x1x4xf32> to vector<4xf32>
    %79 = vector.shape_cast %78 : vector<4xf32> to vector<1x1x4xf32>
    %80 = vector.broadcast %79 : vector<1x1x4xf32> to vector<4x16x4xf32>
    %81 = arith.mulf %76, %80 : vector<4x16x4xf32>
    %82 = arith.addf %75, %81 : vector<4x16x4xf32>
    %c0_17 = arith.constant 0 : index
    %c0_18 = arith.constant 0 : index
    %83 = vector.load %arg6[%c0_17, %c0_18] : memref<1x4xf32, #tpu.memory_space<vmem>>, vector<1x4xf32>
    %84 = vector.shape_cast %83 : vector<1x4xf32> to vector<4xf32>
    %85 = vector.shape_cast %84 : vector<4xf32> to vector<1x1x4xf32>
    %86 = vector.broadcast %85 : vector<1x1x4xf32> to vector<4x16x4xf32>
    %87 = arith.addf %82, %86 : vector<4x16x4xf32>
    %cst_19 = arith.constant 0.000000e+00 : f32
    %88 = vector.broadcast %cst_19 : f32 to vector<4x16x4xf32>
    %89 = arith.maximumf %87, %88 : vector<4x16x4xf32>
    %90 = vector.shape_cast %89 : vector<4x16x4xf32> to vector<64x4xf32>
    %91 = arith.truncf %90 : vector<64x4xf32> to vector<64x4xbf16>
    %c0_20 = arith.constant 0 : index
    %c0_21 = arith.constant 0 : index
    %92 = vector.load %arg7[%c0_20, %c0_21] : memref<4x128xbf16, #tpu.memory_space<vmem>>, vector<4x128xbf16>
    %cst_22 = arith.constant dense<0.000000e+00> : vector<64x128xf32>
    %93 = tpu.matmul %91, %92, %cst_22 {dimension_numbers = #tpu.dot_dimension_numbers<[1], [0], [0], [1], [0, 0, 1, 1], [], []>} : vector<64x4xbf16>, vector<4x128xbf16>, vector<64x128xf32> -> vector<64x128xf32>
    %c0_23 = arith.constant 0 : index
    %c0_24 = arith.constant 0 : index
    %94 = vector.load %arg8[%c0_23, %c0_24] : memref<1x128xf32, #tpu.memory_space<vmem>>, vector<1x128xf32>
    %95 = vector.broadcast %94 : vector<1x128xf32> to vector<64x128xf32>
    %96 = arith.addf %93, %95 : vector<64x128xf32>
    %cst_25 = arith.constant 0.000000e+00 : f32
    %97 = vector.broadcast %cst_25 : f32 to vector<64x128xf32>
    %98 = arith.maximumf %96, %97 : vector<64x128xf32>
    %99 = vector.shape_cast %98 : vector<64x128xf32> to vector<4x16x128xf32>
    %c0_26 = arith.constant 0 : index
    %c0_27 = arith.constant 0 : index
    %c0_28 = arith.constant 0 : index
    %c0_29 = arith.constant 0 : index
    %100 = vector.load %arg9[%c0_26, %c0_27, %c0_28, %c0_29] : memref<1x8x16x128xf32, #tpu.memory_space<vmem>>, vector<1x4x16x128xf32>
    %101 = vector.shape_cast %100 : vector<1x4x16x128xf32> to vector<4x16x128xf32>
    %102 = vector.shape_cast %99 : vector<4x16x128xf32> to vector<1x4x16x128xf32>
    tpu.vector_store %arg9[%c0_26, %c0_27, %c0_28, %c0_29], %102 {strides = array<i32>} : memref<1x8x16x128xf32, #tpu.memory_space<vmem>>, vector<1x4x16x128xf32>,
    %103 = vector.extract_strided_slice %18 {offsets = [4, 0, 0], sizes = [4, 16, 4], strides = [1, 1, 1]} : vector<10x16x4xf32> to vector<4x16x4xf32>
    %104 = vector.extract_strided_slice %17 {offsets = [0, 0, 0], sizes = [1, 1, 4], strides = [1, 1, 1]} : vector<3x3x4xf32> to vector<1x1x4xf32>
    %105 = vector.shape_cast %104 : vector<1x1x4xf32> to vector<4xf32>
    %106 = vector.shape_cast %105 : vector<4xf32> to vector<1x1x4xf32>
    %107 = vector.broadcast %106 : vector<1x1x4xf32> to vector<4x16x4xf32>
    %108 = arith.mulf %103, %107 : vector<4x16x4xf32>
    %109 = vector.extract_strided_slice %19 {offsets = [4, 0, 0], sizes = [4, 16, 4], strides = [1, 1, 1]} : vector<10x16x4xf32> to vector<4x16x4xf32>
    %110 = vector.extract_strided_slice %17 {offsets = [0, 1, 0], sizes = [1, 1, 4], strides = [1, 1, 1]} : vector<3x3x4xf32> to vector<1x1x4xf32>
    %111 = vector.shape_cast %110 : vector<1x1x4xf32> to vector<4xf32>
    %112 = vector.shape_cast %111 : vector<4xf32> to vector<1x1x4xf32>
    %113 = vector.broadcast %112 : vector<1x1x4xf32> to vector<4x16x4xf32>
    %114 = arith.mulf %109, %113 : vector<4x16x4xf32>
    %115 = arith.addf %108, %114 : vector<4x16x4xf32>
    %116 = vector.extract_strided_slice %20 {offsets = [4, 0, 0], sizes = [4, 16, 4], strides = [1, 1, 1]} : vector<10x16x4xf32> to vector<4x16x4xf32>
    %117 = vector.extract_strided_slice %17 {offsets = [0, 2, 0], sizes = [1, 1, 4], strides = [1, 1, 1]} : vector<3x3x4xf32> to vector<1x1x4xf32>
    %118 = vector.shape_cast %117 : vector<1x1x4xf32> to vector<4xf32>
    %119 = vector.shape_cast %118 : vector<4xf32> to vector<1x1x4xf32>
    %120 = vector.broadcast %119 : vector<1x1x4xf32> to vector<4x16x4xf32>
    %121 = arith.mulf %116, %120 : vector<4x16x4xf32>
    %122 = arith.addf %115, %121 : vector<4x16x4xf32>
    %123 = vector.extract_strided_slice %18 {offsets = [5, 0, 0], sizes = [4, 16, 4], strides = [1, 1, 1]} : vector<10x16x4xf32> to vector<4x16x4xf32>
    %124 = vector.extract_strided_slice %17 {offsets = [1, 0, 0], sizes = [1, 1, 4], strides = [1, 1, 1]} : vector<3x3x4xf32> to vector<1x1x4xf32>
    %125 = vector.shape_cast %124 : vector<1x1x4xf32> to vector<4xf32>
    %126 = vector.shape_cast %125 : vector<4xf32> to vector<1x1x4xf32>
    %127 = vector.broadcast %126 : vector<1x1x4xf32> to vector<4x16x4xf32>
    %128 = arith.mulf %123, %127 : vector<4x16x4xf32>
    %129 = arith.addf %122, %128 : vector<4x16x4xf32>
    %130 = vector.extract_strided_slice %19 {offsets = [5, 0, 0], sizes = [4, 16, 4], strides = [1, 1, 1]} : vector<10x16x4xf32> to vector<4x16x4xf32>
    %131 = vector.extract_strided_slice %17 {offsets = [1, 1, 0], sizes = [1, 1, 4], strides = [1, 1, 1]} : vector<3x3x4xf32> to vector<1x1x4xf32>
    %132 = vector.shape_cast %131 : vector<1x1x4xf32> to vector<4xf32>
    %133 = vector.shape_cast %132 : vector<4xf32> to vector<1x1x4xf32>
    %134 = vector.broadcast %133 : vector<1x1x4xf32> to vector<4x16x4xf32>
    %135 = arith.mulf %130, %134 : vector<4x16x4xf32>
    %136 = arith.addf %129, %135 : vector<4x16x4xf32>
    %137 = vector.extract_strided_slice %20 {offsets = [5, 0, 0], sizes = [4, 16, 4], strides = [1, 1, 1]} : vector<10x16x4xf32> to vector<4x16x4xf32>
    %138 = vector.extract_strided_slice %17 {offsets = [1, 2, 0], sizes = [1, 1, 4], strides = [1, 1, 1]} : vector<3x3x4xf32> to vector<1x1x4xf32>
    %139 = vector.shape_cast %138 : vector<1x1x4xf32> to vector<4xf32>
    %140 = vector.shape_cast %139 : vector<4xf32> to vector<1x1x4xf32>
    %141 = vector.broadcast %140 : vector<1x1x4xf32> to vector<4x16x4xf32>
    %142 = arith.mulf %137, %141 : vector<4x16x4xf32>
    %143 = arith.addf %136, %142 : vector<4x16x4xf32>
    %144 = vector.extract_strided_slice %18 {offsets = [6, 0, 0], sizes = [4, 16, 4], strides = [1, 1, 1]} : vector<10x16x4xf32> to vector<4x16x4xf32>
    %145 = vector.extract_strided_slice %17 {offsets = [2, 0, 0], sizes = [1, 1, 4], strides = [1, 1, 1]} : vector<3x3x4xf32> to vector<1x1x4xf32>
    %146 = vector.shape_cast %145 : vector<1x1x4xf32> to vector<4xf32>
    %147 = vector.shape_cast %146 : vector<4xf32> to vector<1x1x4xf32>
    %148 = vector.broadcast %147 : vector<1x1x4xf32> to vector<4x16x4xf32>
    %149 = arith.mulf %144, %148 : vector<4x16x4xf32>
    %150 = arith.addf %143, %149 : vector<4x16x4xf32>
    %151 = vector.extract_strided_slice %19 {offsets = [6, 0, 0], sizes = [4, 16, 4], strides = [1, 1, 1]} : vector<10x16x4xf32> to vector<4x16x4xf32>
    %152 = vector.extract_strided_slice %17 {offsets = [2, 1, 0], sizes = [1, 1, 4], strides = [1, 1, 1]} : vector<3x3x4xf32> to vector<1x1x4xf32>
    %153 = vector.shape_cast %152 : vector<1x1x4xf32> to vector<4xf32>
    %154 = vector.shape_cast %153 : vector<4xf32> to vector<1x1x4xf32>
    %155 = vector.broadcast %154 : vector<1x1x4xf32> to vector<4x16x4xf32>
    %156 = arith.mulf %151, %155 : vector<4x16x4xf32>
    %157 = arith.addf %150, %156 : vector<4x16x4xf32>
    %158 = vector.extract_strided_slice %20 {offsets = [6, 0, 0], sizes = [4, 16, 4], strides = [1, 1, 1]} : vector<10x16x4xf32> to vector<4x16x4xf32>
    %159 = vector.extract_strided_slice %17 {offsets = [2, 2, 0], sizes = [1, 1, 4], strides = [1, 1, 1]} : vector<3x3x4xf32> to vector<1x1x4xf32>
    %160 = vector.shape_cast %159 : vector<1x1x4xf32> to vector<4xf32>
    %161 = vector.shape_cast %160 : vector<4xf32> to vector<1x1x4xf32>
    %162 = vector.broadcast %161 : vector<1x1x4xf32> to vector<4x16x4xf32>
    %163 = arith.mulf %158, %162 : vector<4x16x4xf32>
    %164 = arith.addf %157, %163 : vector<4x16x4xf32>
    %c0_30 = arith.constant 0 : index
    %c0_31 = arith.constant 0 : index
    %165 = vector.load %arg6[%c0_30, %c0_31] : memref<1x4xf32, #tpu.memory_space<vmem>>, vector<1x4xf32>
    %166 = vector.shape_cast %165 : vector<1x4xf32> to vector<4xf32>
    %167 = vector.shape_cast %166 : vector<4xf32> to vector<1x1x4xf32>
    %168 = vector.broadcast %167 : vector<1x1x4xf32> to vector<4x16x4xf32>
    %169 = arith.addf %164, %168 : vector<4x16x4xf32>
    %cst_32 = arith.constant 0.000000e+00 : f32
    %170 = vector.broadcast %cst_32 : f32 to vector<4x16x4xf32>
    %171 = arith.maximumf %169, %170 : vector<4x16x4xf32>
    %172 = vector.shape_cast %171 : vector<4x16x4xf32> to vector<64x4xf32>
    %173 = arith.truncf %172 : vector<64x4xf32> to vector<64x4xbf16>
    %c0_33 = arith.constant 0 : index
    %c0_34 = arith.constant 0 : index
    %174 = vector.load %arg7[%c0_33, %c0_34] : memref<4x128xbf16, #tpu.memory_space<vmem>>, vector<4x128xbf16>
    %cst_35 = arith.constant dense<0.000000e+00> : vector<64x128xf32>
    %175 = tpu.matmul %173, %174, %cst_35 {dimension_numbers = #tpu.dot_dimension_numbers<[1], [0], [0], [1], [0, 0, 1, 1], [], []>} : vector<64x4xbf16>, vector<4x128xbf16>, vector<64x128xf32> -> vector<64x128xf32>
    %c0_36 = arith.constant 0 : index
    %c0_37 = arith.constant 0 : index
    %176 = vector.load %arg8[%c0_36, %c0_37] : memref<1x128xf32, #tpu.memory_space<vmem>>, vector<1x128xf32>
    %177 = vector.broadcast %176 : vector<1x128xf32> to vector<64x128xf32>
    %178 = arith.addf %175, %177 : vector<64x128xf32>
    %cst_38 = arith.constant 0.000000e+00 : f32
    %179 = vector.broadcast %cst_38 : f32 to vector<64x128xf32>
    %180 = arith.maximumf %178, %179 : vector<64x128xf32>
    %181 = vector.shape_cast %180 : vector<64x128xf32> to vector<4x16x128xf32>
    %c0_39 = arith.constant 0 : index
    %c4 = arith.constant 4 : index
    %c0_40 = arith.constant 0 : index
    %c0_41 = arith.constant 0 : index
    %182 = vector.load %arg9[%c0_39, %c4, %c0_40, %c0_41] : memref<1x8x16x128xf32, #tpu.memory_space<vmem>>, vector<1x4x16x128xf32>
    %183 = vector.shape_cast %182 : vector<1x4x16x128xf32> to vector<4x16x128xf32>
    %184 = vector.shape_cast %181 : vector<4x16x128xf32> to vector<1x4x16x128xf32>
    tpu.vector_store %arg9[%c0_39, %c4, %c0_40, %c0_41], %184 {strides = array<i32>} : memref<1x8x16x128xf32, #tpu.memory_space<vmem>>, vector<1x4x16x128xf32>,
    return
  }
  func.func @transform_0(%arg0: i32, %arg1: i32) -> (i32, i32, i32, i32) {
    %c0_i32 = arith.constant 0 : i32
    %c0_i32_0 = arith.constant 0 : i32
    %c0_i32_1 = arith.constant 0 : i32
    return %arg0, %arg1, %c0_i32, %c0_i32_0 : i32, i32, i32, i32
  }
  func.func @transform_1(%arg0: i32, %arg1: i32) -> (i32, i32, i32, i32) {
    %c8_i32 = arith.constant 8 : i32
    %0 = arith.muli %arg1, %c8_i32 : i32
    %c1_i32 = arith.constant 1 : i32
    %1 = arith.subi %0, %c1_i32 : i32
    %c0_i32 = arith.constant 0 : i32
    %2 = arith.maxsi %1, %c0_i32 : i32
    %c0_i32_0 = arith.constant 0 : i32
    %c0_i32_1 = arith.constant 0 : i32
    %c0_i32_2 = arith.constant 0 : i32
    return %arg0, %2, %c0_i32_0, %c0_i32_1 : i32, i32, i32, i32
  }
  func.func @transform_2(%arg0: i32, %arg1: i32) -> (i32, i32, i32, i32) {
    %c8_i32 = arith.constant 8 : i32
    %0 = arith.muli %arg1, %c8_i32 : i32
    %c8_i32_0 = arith.constant 8 : i32
    %1 = arith.addi %0, %c8_i32_0 : i32
    %c15_i32 = arith.constant 15 : i32
    %2 = arith.minsi %1, %c15_i32 : i32
    %c0_i32 = arith.constant 0 : i32
    %c0_i32_1 = arith.constant 0 : i32
    %c0_i32_2 = arith.constant 0 : i32
    return %arg0, %2, %c0_i32, %c0_i32_1 : i32, i32, i32, i32
  }
  func.func @transform_3(%arg0: i32, %arg1: i32) -> (i32, i32, i32) {
    %c0_i32 = arith.constant 0 : i32
    %c0_i32_0 = arith.constant 0 : i32
    %c0_i32_1 = arith.constant 0 : i32
    %c0_i32_2 = arith.constant 0 : i32
    return %c0_i32, %c0_i32_0, %c0_i32_1 : i32, i32, i32
  }
  func.func @transform_4(%arg0: i32, %arg1: i32) -> (i32, i32) {
    %c0_i32 = arith.constant 0 : i32
    %c0_i32_0 = arith.constant 0 : i32
    %c0_i32_1 = arith.constant 0 : i32
    return %c0_i32, %c0_i32_0 : i32, i32
  }
  func.func @transform_5(%arg0: i32, %arg1: i32) -> (i32, i32) {
    %c0_i32 = arith.constant 0 : i32
    %c0_i32_0 = arith.constant 0 : i32
    %c0_i32_1 = arith.constant 0 : i32
    return %c0_i32, %c0_i32_0 : i32, i32
  }
  func.func @transform_6(%arg0: i32, %arg1: i32) -> (i32, i32) {
    %c0_i32 = arith.constant 0 : i32
    %c0_i32_0 = arith.constant 0 : i32
    %c0_i32_1 = arith.constant 0 : i32
    return %c0_i32, %c0_i32_0 : i32, i32
  }
  func.func @transform_7(%arg0: i32, %arg1: i32) -> (i32, i32, i32, i32) {
    %c0_i32 = arith.constant 0 : i32
    %c0_i32_0 = arith.constant 0 : i32
    %c0_i32_1 = arith.constant 0 : i32
    return %arg0, %arg1, %c0_i32, %c0_i32_0 : i32, i32, i32, i32
  }
}

</mosaic_0001>

<bundles_post_ra>
// kernel: dsconv_forward.1
= control target key start
LH: loop header
LB: loop body
LE: loop exit
PB: predicated region body
PF: predicated region fallthrough
CT: control target
= control target key end

     0   :  { %s1954_s24 = smov 0   ;;  %s1956_s25 = smov 0   ;;  %s2714_s0 = inlined_call_operand.vmem [shape: f32[2,16,18,4], index: 0, kind: input, shape index: {}, may-alias: {0,1,2}]   ;;  %s2715_s1 = inlined_call_operand.vmem [shape: f32[2,16,18,4], index: 1, kind: input, shape index: {}, may-alias: {0,1,2}]   ;;  %s2716_s2 = inlined_call_operand.vmem [shape: f32[2,16,18,4], index: 2, kind: input, shape index: {}, may-alias: {0,1,2}]   ;;  %s2717_s3 = inlined_call_operand.vmem [shape: f32[3,3,4], index: 3, kind: input, shape index: {}]   ;;  %s2718_s4 = inlined_call_operand.vmem [shape: f32[1,4], index: 4, kind: input, shape index: {}]   ;;  %s2719_s5 = inlined_call_operand.vmem [shape: bf16[4,128], index: 5, kind: input, shape index: {}]   ;;  %s2720_s6 = inlined_call_operand.vmem [shape: f32[1,128], index: 6, kind: input, shape index: {}]   ;;  %s2721_s7 = inlined_call_operand.vmem [shape: f32[2,16,16,128], index: 7, kind: output, shape index: {}]  }
   0x1   :  { %s1958_s26 = smov 0   ;;  %s1960_s27 = smov 0  }
   0x2   :  { %s1962_s28 = smov 0  }
   0x3 LB: > { %s26_s29 = sadd.s32 1, %s1904_s26  ;;  %s29_s30 = sadd.s32 1, %s1908_s27  ;;  %s1912_s28 = sphi %s1962_s28, %s17_s28   ;;  %s1908_s27 = sphi %s1960_s27, %s2726_s27   ;;  %s1904_s26 = sphi %s1958_s26, %s2725_s26   ;;  %s1900_s25 = sphi %s1956_s25, %s2724_s25   ;;  %s1896_s24 = sphi %s1954_s24, %s2723_s24  }
   0x4   : > { %p27_p0 = scmp.ge.s32.totalorder %s26_s29, 2  ;;  %p1747_p1 = scmp.ge.s32.totalorder %s1912_s28, 1 }
   0x5   : > { %p323_p2 = scmp.lt.s32.totalorder %s1912_s28, 5 }
   0x6   : > { %s2728_s29 = smov (%p27_p0, %s26_s29), 0  ;;  %s2730_s30 = smov (!%p27_p0, %s29_s30), %s1908_s27 }
   0x7   : > { %p324_p3 = pnand %p1747_p1, %p323_p2  ;;  %p31_p4 = scmp.ge.s32.totalorder %s2730_s30, 2 }
   0x8   : > { %vm979_vm0 = vcmask (!%p324_p3), 1041408   ;;  %v1491_v0 = vld [vmem:[%s2719_s5] sm:$0x3] (!%p324_p3)  ;;  %s1993_s12 = sshll.u32 (!%p324_p3), %s1896_s24, 3  ;;  %v493_v2 = vlaneseq (!%p324_p3)  ;;  %p392_p5 = scmp.lt.s32.totalorder (!%p324_p3), %s1900_s25, 1  ;;  %vm533_vm1 = vcmask (!%p324_p3), 1046528  }
   0x9   : > { %s2732_s30 = smov (%p31_p4, %s2730_s30), 0  ;;  %327 = sbr.rel (%p324_p3) target bundleno = 405 (0x195), region = 48 }
   0xa   : > { %v958_v1 = vld [vmem:[%s2719_s5] sm:$0x3] (!%p324_p3)  ;;  %1822 = vmatprep.subr.msk.bf16.mxu1 (!%p324_p3), %vm979_vm0, %v1491_v0  ;;  %v1512_v3 = vsel (!%p324_p3), %vm979_vm0, %v1491_v0, 0  ;;  %p394_p6 = scmp.lt.s32.totalorder (!%p324_p3), %s1993_s12, 15  ;;  %v494_v4 = vshrl.u32 (!%p324_p3), %v493_v2, 7  ;;  %vm598_vm2 = vcmask (!%p324_p3), 1045504  }
   0xb   : > { %1821 = vmatprep.subr.msk.bf16.mxu0 (!%p324_p3), %vm979_vm0, %v958_v1  ;;  %1812 = vmatpush3.bf16.msra.mxu1 (!%p324_p3), %v1512_v3  ;;  %v981_v5 = vsel (!%p324_p3), %vm979_vm0, %v958_v1, 0  ;;  %v490_v8 = vld [vmem:[%s2717_s3] sm:$0x7] (!%p324_p3)  ;;  %v491_v10 = vld [vmem:[%s2717_s3 + $0x4] sm:$0x7] (!%p324_p3)  ;;  %s420_s11 = sadd.s32 (!%p324_p3), 8, %s1993_s12 }
   0xc   : > { %v495_v6 = vsub.s32 (!%p324_p3), 0, %v494_v4  ;;  %v507_v7 = vsub.s32 (!%p324_p3), 1, %v494_v4  ;;  %1802 = vmatpush3.bf16.msra.mxu0 (!%p324_p3), %v981_v5  ;;  %v572_v9 = vsub.s32 (!%p324_p3), 2, %v494_v4  ;;  %v492_v11 = vld [vmem:[%s2717_s3 + $0x8] sm:$0x7] (!%p324_p3)  ;;  %p2058_p7 = scmp.lt.s32.totalorder (!%p324_p3), %s420_s11, 15 }
   0xd   : > { %s2072_s16 = sadd.s32 (!%p324_p3), 4294967295, %s1993_s12  ;;  %vm966_vm3 = vcmask (!%p324_p3), 31744   ;;  %p451_p10 = scmp.gt.s32.totalorder (!%p324_p3), %s1896_s24, 0 }
   0xe   : > { %v2015_v12 = vrot.slane (!%p324_p3), %v490_v8, %v495_v6  ;;  %v2017_v13 = vrot.slane (!%p324_p3), %v490_v8, %v507_v7  ;;  %v2019_v14 = vrot.slane (!%p324_p3), %v490_v8, %v572_v9  ;;  %v2026_v15 = vrot.slane (!%p324_p3), %v491_v10, %v495_v6  ;;  %p404_p8 = scmp.gt.s32.totalorder (!%p324_p3), %s2072_s16, 0  ;;  %p1752_p9 = scmp.lt.s32.totalorder (!%p324_p3), %s2072_s16, 15 }
   0xf   : > { %v2028_v16 = vrot.slane (!%p324_p3), %v491_v10, %v507_v7  ;;  %v2034_v20 = vrot.slane (!%p324_p3), %v491_v10, %v572_v9  ;;  %v2036_v21 = vrot.slane (!%p324_p3), %v492_v11, %v495_v6  ;;  %v2038_v22 = vrot.slane (!%p324_p3), %v492_v11, %v507_v7  ;;  %p460_p11 = scmp.lt.s32.totalorder (!%p324_p3), %s1896_s24, 1 }
  0x10   : > { %s2734_s25 = smov (!%p392_p5, %s1900_s25), 1  ;;  %v2040_v23 = vrot.slane %v492_v11, %v572_v9  ;;  %s2736_s11 = smov (!%p2058_p7, %s420_s11), 15 }
  0x11   : > { %s1999_s13 = scalar_select %p394_p6, %s1993_s12, 15 }
  0x12   : > { %s2002_s14 = smul.u32 48, %s2734_s25  ;;  %s2738_s11 = smov (!%p2058_p7, %s2736_s11), 15 }
  0x13   : > { %s1823_s17 = smul.u32 3, %s1999_s13 }
  0x14   : > { %s405_s12 = scalar_select %p404_p8, %s2072_s16, 0 }
  0x15   : > { %s398_s20 = sadd.s32 %s2002_s14, %s1823_s17  ;;  %s2126_s17 = smul.u32 3, %s2738_s11 }
  0x16   : > { %s1749_s23 = sshll.u32 %s398_s20, 3  ;;  %s2740_s12 = smov (!%p1752_p9, %s405_s12), 15 }
  0x17   : > { %s2024_s10 = scalar_lea.vmem %s2714_s0, %s1749_s23  ;;  %s429_s18 = sadd.s32 %s2126_s17, %s2002_s14 }
  0x18   : > { %v475_v17 = vld [vmem:[%s2024_s10 + $0x48] sm:$0xff]  ;;  %v476_v18 = vld [vmem:[%s2024_s10 + $0x50] sm:$0xff]  ;;  %v477_v19 = vld [vmem:[%s2024_s10 + $0x58] sm:$0x3]  ;;  %s1825_s21 = smul.u32 3, %s2740_s12  ;;  %s1764_s16 = sshll.u32 %s1999_s13, 1 }
  0x19   : > { %v1064_v24 = vmul.f32 %v2015_v12, %v475_v17  ;;  %v1065_v25 = vmul.f32 %v2015_v12, %v476_v18  ;;  %v1072_v26 = vmul.f32 %v2017_v13, %v475_v17  ;;  %v1073_v27 = vmul.f32 %v2017_v13, %v476_v18  ;;  %v2047_v28 = vld [vmem:[%s2024_s10 + $0x60] sm:$0xff]  ;;  %v2050_v29 = vld [vmem:[%s2024_s10 + $0x88] sm:$0x3]  ;;  %v2081_v47 = vld [vmem:[%s2024_s10 + $0x70] sm:$0x3]  ;;  %s1765_s12 = sshll.u32 %s2734_s25, 5 }
  0x1a   : > { %v1074_v30 = vmul.f32 %v2017_v13, %v477_v19  ;;  %v1132_v31 = vmul.f32 %v2019_v14, %v475_v17  ;;  %v1133_v32 = vmul.f32 %v2019_v14, %v476_v18  ;;  %v1134_v33 = vmul.f32 %v2019_v14, %v477_v19  ;;  %v2069_v38 = vld [vmem:[%s2024_s10 + $0x68] sm:$0xff]  ;;  %v2098_v56 = vld [vmem:[%s2024_s10 + $0x78] sm:$0xff]  ;;  %v2109_v1 = vld [vmem:[%s2024_s10 + $0x80] sm:$0xff]  ;;  %s2180_s22 = sadd.s32 %s1825_s21, %s2002_s14  ;;  %s2234_s19 = sadd.s32 %s1765_s12, %s1764_s16 }
  0x1b   : > { %v2064_v34 = vmul.f32 %v2017_v13, %v2050_v29  ;;  %v1096_v35 = vrot.slane %v1072_v26, 1  ;;  %v1097_v36 = vrot.slane %v1073_v27, 1  ;;  %v1192_v37 = vmul.f32 %v2026_v15, %v2047_v28  ;;  %s1757_s23 = sshll.u32 %s2180_s22, 3  ;;  %s1762_s25 = sshll.u32 %s429_s18, 3 }
  0x1c   : > { %v1099_v39 = vrot.slane %v1074_v30, 1  ;;  %v1156_v40 = vrot.slane %v1132_v31, 2  ;;  %v1157_v41 = vrot.slane %v1133_v32, 2  ;;  %v1159_v42 = vrot.slane %v1134_v33, 2  ;;  %s414_s11 = scalar_lea.vmem %s2715_s1, %s1757_s23  ;;  %s431_s17 = scalar_lea.vmem %s2716_s2, %s1762_s25 }
  0x1d   : > { %v1098_v43 = vsel %vm533_vm1, %v1096_v35, %v1097_v36  ;;  %v1109_v44 = vrot.slane %v2064_v34, 1  ;;  %v1193_v45 = vmul.f32 %v2026_v15, %v2069_v38  ;;  %v1208_v46 = vmul.f32 %v2028_v16, %v2047_v28  ;;  %s452_s15 = scalar_select %p451_p10, 1.0, 0.0 }
  0x1e   : > { %v1100_v48 = vsel %vm533_vm1, %v1097_v36, %v1099_v39  ;;  %v1124_v49 = vadd.f32 %v1098_v43, %v1064_v24  ;;  %v1158_v50 = vsel %vm598_vm2, %v1156_v40, %v1157_v41  ;;  %v1160_v51 = vsel %vm598_vm2, %v1157_v41, %v1159_v42  ;;  %s461_s18 = scalar_select %p460_p11, 1.0, 0.0 }
  0x1f   : > { %v1125_v52 = vadd.f32 %v1100_v48, %v1065_v25  ;;  %v1209_v53 = vmul.f32 %v2028_v16, %v2069_v38  ;;  %v1210_v54 = vmul.f32 %v2028_v16, %v2081_v47  ;;  %v1232_v55 = vrot.slane %v1208_v46, 1  ;;  %s1766_s22 = sshll.u32 %s2234_s19, 3 }
  0x20   : > { %v1184_v57 = vadd.f32 %v1158_v50, %v1124_v49  ;;  %v1268_v58 = vmul.f32 %v2034_v20, %v2047_v28  ;;  %v1269_v59 = vmul.f32 %v2034_v20, %v2069_v38  ;;  %v1270_v60 = vmul.f32 %v2034_v20, %v2081_v47  ;;  %s2681_s9 = scalar_lea.vmem %s2721_s7, %s1766_s22 }
  0x21   : > { %v1185_v61 = vadd.f32 %v1160_v51, %v1125_v52  ;;  %v1233_v62 = vrot.slane %v1209_v53, 1  ;;  %v1235_v63 = vrot.slane %v1210_v54, 1  ;;  %v1328_v0 = vmul.f32 %v2036_v21, %v2098_v56  ;;  %v2157_v54 = vld [vmem:[%s2718_s4] ss:$0 sm:$0xff] }
  0x22   : > { %v1200_v2 = vadd.f32 %v1192_v37, %v1184_v57  ;;  %v1292_v3 = vrot.slane %v1268_v58, 2  ;;  %v1293_v4 = vrot.slane %v1269_v59, 2  ;;  %v1295_v5 = vrot.slane %v1270_v60, 2 }
  0x23   : > { %v1201_v6 = vadd.f32 %v1193_v45, %v1185_v61  ;;  %v1234_v7 = vsel %vm533_vm1, %v1232_v55, %v1233_v62  ;;  %v1236_v8 = vsel %vm533_vm1, %v1233_v62, %v1235_v63  ;;  %v1329_v9 = vmul.f32 %v2036_v21, %v2109_v1 }
  0x24   : > { %v1260_v10 = vadd.f32 %v1234_v7, %v1200_v2  ;;  %v1294_v11 = vsel %vm598_vm2, %v1292_v3, %v1293_v4  ;;  %v1296_v17 = vsel %vm598_vm2, %v1293_v4, %v1295_v5  ;;  %v1344_v18 = vmul.f32 %v2038_v22, %v2098_v56 }
  0x25   : > { %v1261_v19 = vadd.f32 %v1236_v8, %v1201_v6  ;;  %v1345_v24 = vmul.f32 %v2038_v22, %v2109_v1  ;;  %v1346_v25 = vmul.f32 %v2038_v22, %v2050_v29  ;;  %v1404_v26 = vmul.f32 %v2040_v23, %v2098_v56 }
  0x26   : > { %v1320_v27 = vadd.f32 %v1294_v11, %v1260_v10  ;;  %v1368_v30 = vrot.slane %v1344_v18, 1  ;;  %v1405_v31 = vmul.f32 %v2040_v23, %v2109_v1  ;;  %v1406_v32 = vmul.f32 %v2040_v23, %v2050_v29 }
  0x27   : > { %v1321_v33 = vadd.f32 %v1296_v17, %v1261_v19  ;;  %v1369_v35 = vrot.slane %v1345_v24, 1  ;;  %v1371_v36 = vrot.slane %v1346_v25, 1  ;;  %v1428_v37 = vrot.slane %v1404_v26, 2 }
  0x28   : > { %v1336_v39 = vadd.f32 %v1328_v0, %v1320_v27  ;;  %v1429_v40 = vrot.slane %v1405_v31, 2  ;;  %v1431_v41 = vrot.slane %v1406_v32, 2  ;;  %v1066_v42 = vmul.f32 %v2015_v12, %v2047_v28 }
  0x29   : > { %v1337_v43 = vadd.f32 %v1329_v9, %v1321_v33  ;;  %v1370_v45 = vsel %vm533_vm1, %v1368_v30, %v1369_v35  ;;  %v1372_v46 = vsel %vm533_vm1, %v1369_v35, %v1371_v36  ;;  %v1067_v48 = vmul.f32 %v2015_v12, %v2069_v38 }
  0x2a   : > { %v1396_v49 = vadd.f32 %v1370_v45, %v1336_v39  ;;  %v1430_v50 = vsel %vm598_vm2, %v1428_v37, %v1429_v40  ;;  %v1432_v51 = vsel %vm598_vm2, %v1429_v40, %v1431_v41  ;;  %v1075_v52 = vmul.f32 %v2017_v13, %v2047_v28  ;;  %v2196_v37 = vld [vmem:[%s2024_s10 + $0x90] sm:$0xff] }
  0x2b   : > { %v1397_v53 = vadd.f32 %v1372_v46, %v1337_v43  ;;  %v1076_v55 = vmul.f32 %v2017_v13, %v2069_v38  ;;  %v1077_v57 = vmul.f32 %v2017_v13, %v2081_v47  ;;  %v1135_v58 = vmul.f32 %v2019_v14, %v2047_v28  ;;  %v2202_v43 = vld [vmem:[%s2024_s10 + $0x98] sm:$0xff] }
  0x2c   : > { %v1456_v59 = vadd.f32 %v1430_v50, %v1396_v49  ;;  %v1101_v60 = vrot.slane %v1075_v52, 1  ;;  %v1136_v61 = vmul.f32 %v2019_v14, %v2069_v38  ;;  %v1137_v62 = vmul.f32 %v2019_v14, %v2081_v47 }
  0x2d   : > { %v1457_v63 = vadd.f32 %v1432_v51, %v1397_v53  ;;  %v1102_v0 = vrot.slane %v1076_v55, 1  ;;  %v1104_v2 = vrot.slane %v1077_v57, 1  ;;  %v1161_v3 = vrot.slane %v1135_v58, 2  ;;  %v2214_v55 = vld [vmem:[%s2024_s10 + $0xa0] sm:$0x3] }
  0x2e   : > { %v1471_v4 = vadd.f32 %v2157_v54, %v1456_v59  ;;  %v1162_v5 = vrot.slane %v1136_v61, 2  ;;  %v1164_v6 = vrot.slane %v1137_v62, 2  ;;  %v1194_v28 = vmul.f32 %v2026_v15, %v2098_v56 }
  0x2f   : > { %v1472_v7 = vadd.f32 %v2157_v54, %v1457_v63  ;;  %v1103_v38 = vsel %vm533_vm1, %v1101_v60, %v1102_v0  ;;  %v1105_v8 = vsel %vm533_vm1, %v1102_v0, %v1104_v2  ;;  %v1195_v47 = vmul.f32 %v2026_v15, %v2109_v1 }
  0x30   : > { %v1479_v9 = vmax.f32 %v1471_v4, 0.0  ;;  %v1126_v10 = vadd.f32 %v1103_v38, %v1066_v42  ;;  %v1127_v11 = vadd.f32 %v1105_v8, %v1067_v48  ;;  %v1163_v17 = vsel %vm598_vm2, %v1161_v3, %v1162_v5 }
  0x31   : > { %v1480_v18 = vmax.f32 %v1472_v7, 0.0  ;;  %v1165_v19 = vsel %vm598_vm2, %v1162_v5, %v1164_v6  ;;  %v1211_v24 = vmul.f32 %v2028_v16, %v2098_v56  ;;  %v1212_v25 = vmul.f32 %v2028_v16, %v2109_v1  ;;  %v448_v6 = vld [vmem:[%s414_s11] sm:$0xff] }
  0x32   : > { %v1186_v26 = vadd.f32 %v1163_v17, %v1126_v10  ;;  %v1187_v27 = vadd.f32 %v1165_v19, %v1127_v11  ;;  %v1213_v30 = vmul.f32 %v2028_v16, %v2050_v29  ;;  %v1271_v31 = vmul.f32 %v2034_v20, %v2098_v56 }
  0x33   : > { %v1487_v32 = vpack.c.bf16 %v1480_v18, %v1479_v9  ;;  %v1237_v33 = vrot.slane %v1211_v24, 1  ;;  %v1238_v35 = vrot.slane %v1212_v25, 1  ;;  %v1272_v36 = vmul.f32 %v2034_v20, %v2109_v1  ;;  %v450_v9 = vld [vmem:[%s414_s11 + $0x10] sm:$0x3] }
  0x34   : > { %v1202_v39 = vadd.f32 %v1194_v28, %v1186_v26  ;;  %v1203_v40 = vadd.f32 %v1195_v47, %v1187_v27  ;;  %v1240_v41 = vrot.slane %v1213_v30, 1  ;;  %v1273_v42 = vmul.f32 %v2034_v20, %v2050_v29  ;;  %v449_v47 = vld [vmem:[%s414_s11 + $0x8] sm:$0xff] }
  0x35   : > { %1813 = vmatprep.mubr.msk.bf16.mxu1 %vm966_vm3, %v1487_v32  ;;  %v1239_v45 = vsel %vm533_vm1, %v1237_v33, %v1238_v35  ;;  %v1297_v46 = vrot.slane %v1271_v31, 2  ;;  %v1298_v48 = vrot.slane %v1272_v36, 2  ;;  %v1330_v49 = vmul.f32 %v2036_v21, %v2196_v37  ;;  %v468_v33 = vld [vmem:[%s2024_s10 + $0x10] sm:$0x3] }
  0x36   : > { %v1241_v50 = vsel %vm533_vm1, %v1238_v35, %v1240_v41  ;;  %v1262_v51 = vadd.f32 %v1239_v45, %v1202_v39  ;;  %v1300_v52 = vrot.slane %v1273_v42, 2  ;;  %v1331_v53 = vmul.f32 %v2036_v21, %v2202_v43  ;;  %v2241_v35 = vld [vmem:[%s2024_s10 + $0x28] sm:$0x3] }
  0x37   : > { %v1263_v57 = vadd.f32 %v1241_v50, %v1203_v40  ;;  %v1299_v58 = vsel %vm598_vm2, %v1297_v46, %v1298_v48  ;;  %v1347_v59 = vmul.f32 %v2038_v22, %v2196_v37  ;;  %v1348_v60 = vmul.f32 %v2038_v22, %v2202_v43 }
  0x38   : > { %v1301_v61 = vsel %vm598_vm2, %v1298_v48, %v1300_v52  ;;  %v1322_v62 = vadd.f32 %v1299_v58, %v1262_v51  ;;  %v1349_v63 = vmul.f32 %v2038_v22, %v2214_v55  ;;  %v1407_v0 = vmul.f32 %v2040_v23, %v2196_v37 }
  0x39   : > { %v1323_v2 = vadd.f32 %v1301_v61, %v1263_v57  ;;  %v1373_v3 = vrot.slane %v1347_v59, 1  ;;  %v1374_v4 = vrot.slane %v1348_v60, 1  ;;  %v1408_v5 = vmul.f32 %v2040_v23, %v2202_v43 }
  0x3a   : > { %v1338_v28 = vadd.f32 %v1330_v49, %v1322_v62  ;;  %v1376_v7 = vrot.slane %v1349_v63, 1  ;;  %v1409_v38 = vmul.f32 %v2040_v23, %v2214_v55  ;;  %v1433_v8 = vrot.slane %v1407_v0, 2 }
  0x3b   : > { %v1339_v10 = vadd.f32 %v1331_v53, %v1323_v2  ;;  %v1375_v11 = vsel %vm533_vm1, %v1373_v3, %v1374_v4  ;;  %v1434_v17 = vrot.slane %v1408_v5, 2  ;;  %v453_v18 = vstv %s452_s15  ;;  %v2266_v5 = vld [vmem:[%s2024_s10] sm:$0xff] }
  0x3c   : > { %v1377_v19 = vsel %vm533_vm1, %v1374_v4, %v1376_v7  ;;  %v1398_v24 = vadd.f32 %v1375_v11, %v1338_v28  ;;  %v1436_v25 = vrot.slane %v1409_v38, 2  ;;  %v454_v26 = vmul.f32 %v453_v18, %v448_v6 }
  0x3d   : > { %v1399_v27 = vadd.f32 %v1377_v19, %v1339_v10  ;;  %v1435_v30 = vsel %vm598_vm2, %v1433_v8, %v1434_v17  ;;  %v455_v31 = vmul.f32 %v453_v18, %v449_v47  ;;  %v456_v32 = vmul.f32 %v453_v18, %v450_v9  ;;  %v467_v47 = vld [vmem:[%s2024_s10 + $0x8] sm:$0xff] }
  0x3e   : > { %v1437_v36 = vsel %vm598_vm2, %v1434_v17, %v1436_v25  ;;  %v1458_v39 = vadd.f32 %v1435_v30, %v1398_v24  ;;  %v497_v40 = vmul.f32 %v2015_v12, %v454_v26  ;;  %v509_v41 = vmul.f32 %v2017_v13, %v454_v26 }
  0x3f   : > { %v1459_v42 = vadd.f32 %v1437_v36, %v1399_v27  ;;  %v498_v45 = vmul.f32 %v2015_v12, %v455_v31  ;;  %v510_v46 = vmul.f32 %v2017_v13, %v455_v31  ;;  %v511_v48 = vmul.f32 %v2017_v13, %v456_v32 }
  0x40   : > { %v1473_v49 = vadd.f32 %v2157_v54, %v1458_v39  ;;  %v2251_v50 = vmul.f32 %v2017_v13, %v468_v33  ;;  %v2255_v51 = vmul.f32 %v2017_v13, %v2241_v35  ;;  %v534_v52 = vrot.slane %v509_v41, 1 }
  0x41   : > { %v1474_v53 = vadd.f32 %v2157_v54, %v1459_v42  ;;  %v535_v57 = vrot.slane %v510_v46, 1  ;;  %v537_v58 = vrot.slane %v511_v48, 1  ;;  %v574_v59 = vmul.f32 %v2019_v14, %v454_v26  ;;  %v2291_v48 = vld [vmem:[%s2024_s10 + $0x20] sm:$0xff] }
  0x42   : > { %v1481_v60 = vmax.f32 %v1473_v49, 0.0  ;;  %v542_v61 = vrot.slane %v2251_v50, 1  ;;  %v547_v62 = vrot.slane %v2255_v51, 1  ;;  %v575_v63 = vmul.f32 %v2019_v14, %v455_v31 }
  0x43   : > { %v1482_v0 = vmax.f32 %v1474_v53, 0.0  ;;  %v536_v2 = vsel %vm533_vm1, %v534_v52, %v535_v57  ;;  %v538_v3 = vsel %vm533_vm1, %v535_v57, %v537_v58  ;;  %v576_v4 = vmul.f32 %v2019_v14, %v456_v32 }
  0x44   : > { %v562_v6 = vadd.f32 %v536_v2, %v497_v40  ;;  %v563_v28 = vadd.f32 %v538_v3, %v498_v45  ;;  %v2269_v7 = vmul.f32 %v2019_v14, %v468_v33  ;;  %v599_v38 = vrot.slane %v574_v59, 2  ;;  %v2286_v40 = vld [vmem:[%s2024_s10 + $0x18] sm:$0xff] }
  0x45   : > { %v1488_v8 = vpack.c.bf16 %v1482_v0, %v1481_v60  ;;  %v600_v9 = vrot.slane %v575_v63, 2  ;;  %v602_v10 = vrot.slane %v576_v4, 2  ;;  %v639_v11 = vmul.f32 %v2026_v15, %v2266_v5 }
  0x46   : > { %v607_v17 = vrot.slane %v2269_v7, 2  ;;  %v640_v18 = vmul.f32 %v2026_v15, %v467_v47  ;;  %v659_v19 = vmul.f32 %v2028_v16, %v2266_v5  ;;  %v660_v24 = vmul.f32 %v2028_v16, %v467_v47 }
  0x47   : > { %1814 = vmatmul.mubr.msk.bf16.vlgmr.msra.gmra.mrb[0].mxu1 %vm966_vm3, %v1488_v8  ;;  %v601_v25 = vsel %vm598_vm2, %v599_v38, %v600_v9  ;;  %v603_v26 = vsel %vm598_vm2, %v600_v9, %v602_v10  ;;  %v661_v27 = vmul.f32 %v2028_v16, %v468_v33  ;;  %v723_v30 = vmul.f32 %v2034_v20, %v2266_v5 }
  0x48   : > { %v627_v31 = vadd.f32 %v601_v25, %v562_v6  ;;  %v628_v32 = vadd.f32 %v603_v26, %v563_v28  ;;  %v683_v36 = vrot.slane %v659_v19, 1  ;;  %v684_v39 = vrot.slane %v660_v24, 1 }
  0x49   : > { %v686_v41 = vrot.slane %v661_v27, 1  ;;  %v724_v42 = vmul.f32 %v2034_v20, %v467_v47  ;;  %v725_v45 = vmul.f32 %v2034_v20, %v468_v33  ;;  %v747_v46 = vrot.slane %v723_v30, 2 }
  0x4a   : > { %v647_v49 = vadd.f32 %v639_v11, %v627_v31  ;;  %v648_v52 = vadd.f32 %v640_v18, %v628_v32  ;;  %v685_v53 = vsel %vm533_vm1, %v683_v36, %v684_v39  ;;  %v787_v57 = vmul.f32 %v2036_v21, %v2286_v40 }
  0x4b   : > { %v687_v58 = vsel %vm533_vm1, %v684_v39, %v686_v41  ;;  %v748_v59 = vrot.slane %v724_v42, 2  ;;  %v750_v60 = vrot.slane %v725_v45, 2  ;;  %v788_v63 = vmul.f32 %v2036_v21, %v2291_v48 }
  0x4c   : > { %v711_v0 = vadd.f32 %v685_v53, %v647_v49  ;;  %v712_v2 = vadd.f32 %v687_v58, %v648_v52  ;;  %v807_v33 = vmul.f32 %v2038_v22, %v2286_v40  ;;  %v808_v3 = vmul.f32 %v2038_v22, %v2291_v48 }
  0x4d   : > { %v749_v4 = vsel %vm598_vm2, %v747_v46, %v748_v59  ;;  %v751_v6 = vsel %vm598_vm2, %v748_v59, %v750_v60  ;;  %v809_v28 = vmul.f32 %v2038_v22, %v2241_v35  ;;  %v871_v38 = vmul.f32 %v2040_v23, %v2286_v40 }
  0x4e   : > { %v775_v8 = vadd.f32 %v749_v4, %v711_v0  ;;  %v776_v9 = vadd.f32 %v751_v6, %v712_v2  ;;  %v831_v10 = vrot.slane %v807_v33, 1  ;;  %v832_v11 = vrot.slane %v808_v3, 1 }
  0x4f   : > { %v834_v18 = vrot.slane %v809_v28, 1  ;;  %v872_v19 = vmul.f32 %v2040_v23, %v2291_v48  ;;  %v873_v24 = vmul.f32 %v2040_v23, %v2241_v35  ;;  %v895_v25 = vrot.slane %v871_v38, 2 }
  0x50   : > { %v795_v26 = vadd.f32 %v787_v57, %v775_v8  ;;  %v796_v27 = vadd.f32 %v788_v63, %v776_v9  ;;  %v833_v30 = vsel %vm533_vm1, %v831_v10, %v832_v11  ;;  %v499_v31 = vmul.f32 %v2015_v12, %v2266_v5 }
  0x51   : > { %v835_v32 = vsel %vm533_vm1, %v832_v11, %v834_v18  ;;  %v896_v36 = vrot.slane %v872_v19, 2  ;;  %v898_v39 = vrot.slane %v873_v24, 2  ;;  %v500_v41 = vmul.f32 %v2015_v12, %v467_v47 }
  0x52   : > { %v859_v42 = vadd.f32 %v833_v30, %v795_v26  ;;  %v860_v45 = vadd.f32 %v835_v32, %v796_v27  ;;  %v512_v46 = vmul.f32 %v2017_v13, %v2266_v5  ;;  %v513_v49 = vmul.f32 %v2017_v13, %v467_v47 }
  0x53   : > { %v897_v52 = vsel %vm598_vm2, %v895_v25, %v896_v36  ;;  %v899_v53 = vsel %vm598_vm2, %v896_v36, %v898_v39  ;;  %v577_v57 = vmul.f32 %v2019_v14, %v2266_v5  ;;  %v578_v58 = vmul.f32 %v2019_v14, %v467_v47 }
  0x54   : > { %v923_v59 = vadd.f32 %v897_v52, %v859_v42  ;;  %v924_v60 = vadd.f32 %v899_v53, %v860_v45  ;;  %v539_v63 = vrot.slane %v512_v46, 1  ;;  %v540_v0 = vrot.slane %v513_v49, 1  ;;  %v2357_v42 = vld [vmem:[%s2024_s10 + $0x38] sm:$0xff] }
  0x55   : > { %v604_v2 = vrot.slane %v577_v57, 2  ;;  %v605_v33 = vrot.slane %v578_v58, 2  ;;  %v641_v3 = vmul.f32 %v2026_v15, %v2286_v40  ;;  %v642_v4 = vmul.f32 %v2026_v15, %v2291_v48 }
  0x56   : > { %v938_v6 = vadd.f32 %v2157_v54, %v923_v59  ;;  %v939_v28 = vadd.f32 %v2157_v54, %v924_v60  ;;  %v541_v5 = vsel %vm533_vm1, %v539_v63, %v540_v0  ;;  %v543_v47 = vsel %vm533_vm1, %v540_v0, %v542_v61  ;;  %v2366_v60 = vld [vmem:[%s2024_s10 + $0x40] sm:$0x3] }
  0x57   : > { %v564_v38 = vadd.f32 %v541_v5, %v499_v31  ;;  %v565_v8 = vadd.f32 %v543_v47, %v500_v41  ;;  %v606_v9 = vsel %vm598_vm2, %v604_v2, %v605_v33  ;;  %v608_v10 = vsel %vm598_vm2, %v605_v33, %v607_v17  ;;  %v2351_v31 = vld [vmem:[%s2024_s10 + $0x30] sm:$0xff] }
  0x58   : > { %v946_v11 = vmax.f32 %v938_v6, 0.0  ;;  %v947_v18 = vmax.f32 %v939_v28, 0.0  ;;  %v662_v19 = vmul.f32 %v2028_v16, %v2286_v40  ;;  %v663_v50 = vmul.f32 %v2028_v16, %v2291_v48 }
  0x59   : > { %v629_v24 = vadd.f32 %v606_v9, %v564_v38  ;;  %v630_v61 = vadd.f32 %v608_v10, %v565_v8  ;;  %v664_v25 = vmul.f32 %v2028_v16, %v2241_v35  ;;  %v726_v26 = vmul.f32 %v2034_v20, %v2286_v40 }
  0x5a   : > { %v954_v7 = vpack.c.bf16 %v947_v18, %v946_v11  ;;  %v688_v27 = vrot.slane %v662_v19, 1  ;;  %v689_v17 = vrot.slane %v663_v50, 1  ;;  %v727_v30 = vmul.f32 %v2034_v20, %v2291_v48 }
  0x5b   : > { %v649_v32 = vadd.f32 %v641_v3, %v629_v24  ;;  %v650_v36 = vadd.f32 %v642_v4, %v630_v61  ;;  %v691_v39 = vrot.slane %v664_v25, 1  ;;  %v728_v41 = vmul.f32 %v2034_v20, %v2241_v35 }
  0x5c   : > { %1803 = vmatprep.mubr.msk.bf16.mxu0 %vm966_vm3, %v954_v7  ;;  %v690_v45 = vsel %vm533_vm1, %v688_v27, %v689_v17  ;;  %v752_v46 = vrot.slane %v726_v26, 2  ;;  %v753_v49 = vrot.slane %v727_v30, 2  ;;  %v789_v52 = vmul.f32 %v2036_v21, %v2351_v31 }
  0x5d   : > { %v692_v53 = vsel %vm533_vm1, %v689_v17, %v691_v39  ;;  %v713_v57 = vadd.f32 %v690_v45, %v649_v32  ;;  %v755_v58 = vrot.slane %v728_v41, 2  ;;  %v790_v59 = vmul.f32 %v2036_v21, %v2357_v42 }
  0x5e   : > { %v714_v63 = vadd.f32 %v692_v53, %v650_v36  ;;  %v754_v0 = vsel %vm598_vm2, %v752_v46, %v753_v49  ;;  %v810_v2 = vmul.f32 %v2038_v22, %v2351_v31  ;;  %v811_v33 = vmul.f32 %v2038_v22, %v2357_v42 }
  0x5f   : > { %v756_v3 = vsel %vm598_vm2, %v753_v49, %v755_v58  ;;  %v777_v4 = vadd.f32 %v754_v0, %v713_v57  ;;  %v812_v6 = vmul.f32 %v2038_v22, %v2366_v60  ;;  %v874_v28 = vmul.f32 %v2040_v23, %v2351_v31 }
  0x60   : > { %v778_v5 = vadd.f32 %v756_v3, %v714_v63  ;;  %v836_v47 = vrot.slane %v810_v2, 1  ;;  %v837_v38 = vrot.slane %v811_v33, 1  ;;  %v875_v8 = vmul.f32 %v2040_v23, %v2357_v42 }
  0x61   : > { %v797_v9 = vadd.f32 %v789_v52, %v777_v4  ;;  %v839_v10 = vrot.slane %v812_v6, 1  ;;  %v876_v11 = vmul.f32 %v2040_v23, %v2366_v60  ;;  %v900_v18 = vrot.slane %v874_v28, 2 }
  0x62   : > { %v798_v19 = vadd.f32 %v790_v59, %v778_v5  ;;  %v838_v50 = vsel %vm533_vm1, %v836_v47, %v837_v38  ;;  %v901_v24 = vrot.slane %v875_v8, 2  ;;  %v1068_v61 = vmul.f32 %v2015_v12, %v2098_v56 }
  0x63   : > { %v840_v25 = vsel %vm533_vm1, %v837_v38, %v839_v10  ;;  %v861_v26 = vadd.f32 %v838_v50, %v797_v9  ;;  %v903_v7 = vrot.slane %v876_v11, 2  ;;  %v1069_v27 = vmul.f32 %v2015_v12, %v2109_v1  ;;  %v2427_v50 = vld [vmem:[%s2024_s10 + $0xa8] sm:$0xff] }
  0x64   : > { %v862_v17 = vadd.f32 %v840_v25, %v798_v19  ;;  %v902_v30 = vsel %vm598_vm2, %v900_v18, %v901_v24  ;;  %v1078_v32 = vmul.f32 %v2017_v13, %v2098_v56  ;;  %v1079_v36 = vmul.f32 %v2017_v13, %v2109_v1 }
  0x65   : > { %v904_v39 = vsel %vm598_vm2, %v901_v24, %v903_v7  ;;  %v925_v41 = vadd.f32 %v902_v30, %v861_v26  ;;  %v1138_v45 = vmul.f32 %v2019_v14, %v2098_v56  ;;  %v1139_v46 = vmul.f32 %v2019_v14, %v2109_v1  ;;  %v2431_v7 = vld [vmem:[%s2024_s10 + $0xb0] sm:$0xff] }
  0x66   : > { %v926_v49 = vadd.f32 %v904_v39, %v862_v17  ;;  %v1106_v52 = vrot.slane %v1078_v32, 1  ;;  %v1107_v53 = vrot.slane %v1079_v36, 1  ;;  %v1140_v57 = vmul.f32 %v2019_v14, %v2050_v29 }
  0x67   : > { %v940_v58 = vadd.f32 %v2157_v54, %v925_v41  ;;  %v1166_v59 = vrot.slane %v1138_v45, 2  ;;  %v1167_v63 = vrot.slane %v1139_v46, 2  ;;  %v1196_v0 = vmul.f32 %v2026_v15, %v2196_v37  ;;  %v2447_v46 = vld [vmem:[%s2024_s10 + $0xb8] sm:$0x3] }
  0x68   : > { %v941_v2 = vadd.f32 %v2157_v54, %v926_v49  ;;  %v1108_v56 = vsel %vm533_vm1, %v1106_v52, %v1107_v53  ;;  %v1110_v1 = vsel %vm533_vm1, %v1107_v53, %v1109_v44  ;;  %v1169_v33 = vrot.slane %v1140_v57, 2 }
  0x69   : > { %v948_v3 = vmax.f32 %v940_v58, 0.0  ;;  %v1128_v29 = vadd.f32 %v1108_v56, %v1068_v61  ;;  %v1129_v4 = vadd.f32 %v1110_v1, %v1069_v27  ;;  %v1168_v6 = vsel %vm598_vm2, %v1166_v59, %v1167_v63 }
  0x6a   : > { %v949_v28 = vmax.f32 %v941_v2, 0.0  ;;  %v1170_v5 = vsel %vm598_vm2, %v1167_v63, %v1169_v33  ;;  %v1197_v47 = vmul.f32 %v2026_v15, %v2202_v43  ;;  %v1214_v34 = vmul.f32 %v2028_v16, %v2196_v37 }
  0x6b   : > { %v1188_v44 = vadd.f32 %v1168_v6, %v1128_v29  ;;  %v1189_v38 = vadd.f32 %v1170_v5, %v1129_v4  ;;  %v1215_v8 = vmul.f32 %v2028_v16, %v2202_v43  ;;  %v1216_v9 = vmul.f32 %v2028_v16, %v2214_v55  ;;  %v458_v5 = vld [vmem:[%s431_s17 + $0x8] sm:$0xff] }
  0x6c   : > { %v955_v10 = vpack.c.bf16 %v949_v28, %v948_v3  ;;  %v1242_v11 = vrot.slane %v1214_v34, 1  ;;  %v1274_v18 = vmul.f32 %v2034_v20, %v2196_v37  ;;  %v1275_v19 = vmul.f32 %v2034_v20, %v2202_v43  ;;  %v457_v3 = vld [vmem:[%s431_s17] sm:$0xff] }
  0x6d   : > { %v1204_v24 = vadd.f32 %v1196_v0, %v1188_v44  ;;  %v1205_v61 = vadd.f32 %v1197_v47, %v1189_v38  ;;  %v1243_v25 = vrot.slane %v1215_v8, 1  ;;  %v1245_v26 = vrot.slane %v1216_v9, 1  ;;  %v459_v38 = vld [vmem:[%s431_s17 + $0x10] sm:$0x3] }
  0x6e   : > { %1804 = vmatmul.mubr.msk.bf16.vlgmr.msra.gmra.mrb[0].mxu0 %vm966_vm3, %v955_v10  ;;  %v1276_v27 = vmul.f32 %v2034_v20, %v2214_v55  ;;  %v1302_v17 = vrot.slane %v1274_v18, 2  ;;  %v1303_v30 = vrot.slane %v1275_v19, 2  ;;  %v1332_v32 = vmul.f32 %v2036_v21, %v2427_v50 }
  0x6f   : > { %v1244_v36 = vsel %vm533_vm1, %v1242_v11, %v1243_v25  ;;  %v1246_v39 = vsel %vm533_vm1, %v1243_v25, %v1245_v26  ;;  %v1333_v41 = vmul.f32 %v2036_v21, %v2431_v7  ;;  %v1350_v45 = vmul.f32 %v2038_v22, %v2427_v50 }
  0x70   : > { %v1264_v49 = vadd.f32 %v1244_v36, %v1204_v24  ;;  %v1265_v52 = vadd.f32 %v1246_v39, %v1205_v61  ;;  %v1304_v53 = vsel %vm598_vm2, %v1302_v17, %v1303_v30  ;;  %v1305_v57 = vrot.slane %v1276_v27, 2 }
  0x71   : > { %v1351_v58 = vmul.f32 %v2038_v22, %v2431_v7  ;;  %v1352_v59 = vmul.f32 %v2038_v22, %v2447_v46  ;;  %v1378_v63 = vrot.slane %v1350_v45, 1  ;;  %v1410_v0 = vmul.f32 %v2040_v23, %v2427_v50 }
  0x72   : > { %v1306_v2 = vsel %vm598_vm2, %v1303_v30, %v1305_v57  ;;  %v1324_v56 = vadd.f32 %v1304_v53, %v1264_v49  ;;  %v1411_v1 = vmul.f32 %v2040_v23, %v2431_v7  ;;  %v1412_v33 = vmul.f32 %v2040_v23, %v2447_v46 }
  0x73   : > { %v1325_v29 = vadd.f32 %v1306_v2, %v1265_v52  ;;  %v1379_v4 = vrot.slane %v1351_v58, 1  ;;  %v1381_v6 = vrot.slane %v1352_v59, 1  ;;  %v1438_v28 = vrot.slane %v1410_v0, 2 }
  0x74   : > { %v1340_v47 = vadd.f32 %v1332_v32, %v1324_v56  ;;  %v1439_v34 = vrot.slane %v1411_v1, 2  ;;  %v1441_v44 = vrot.slane %v1412_v33, 2  ;;  %v462_v8 = vstv %s461_s18 }
  0x75   : > { %v1341_v9 = vadd.f32 %v1333_v41, %v1325_v29  ;;  %v1380_v10 = vsel %vm533_vm1, %v1378_v63, %v1379_v4  ;;  %v1382_v11 = vsel %vm533_vm1, %v1379_v4, %v1381_v6  ;;  %v2465_v18 = vmul.f32 %v462_v8, %v457_v3 }
  0x76   : > { %v1400_v19 = vadd.f32 %v1380_v10, %v1340_v47  ;;  %v1440_v24 = vsel %vm598_vm2, %v1438_v28, %v1439_v34  ;;  %v1442_v61 = vsel %vm598_vm2, %v1439_v34, %v1441_v44  ;;  %v2469_v25 = vmul.f32 %v462_v8, %v458_v5 }
  0x77   : > { %v1401_v26 = vadd.f32 %v1382_v11, %v1341_v9  ;;  %v2471_v27 = vmul.f32 %v462_v8, %v459_v38  ;;  %v1070_v17 = vmul.f32 %v2015_v12, %v2196_v37  ;;  %v1071_v30 = vmul.f32 %v2015_v12, %v2202_v43 }
  0x78   : > { %v1460_v32 = vadd.f32 %v1440_v24, %v1400_v19  ;;  %v1081_v36 = vmul.f32 %v2017_v13, %v2196_v37  ;;  %v1082_v39 = vmul.f32 %v2017_v13, %v2202_v43  ;;  %v1083_v41 = vmul.f32 %v2017_v13, %v2214_v55 }
  0x79   : > { %v1461_v45 = vadd.f32 %v1442_v61, %v1401_v26  ;;  %v1141_v49 = vmul.f32 %v2019_v14, %v2196_v37  ;;  %v1142_v52 = vmul.f32 %v2019_v14, %v2202_v43  ;;  %v1143_v53 = vmul.f32 %v2019_v14, %v2214_v55 }
  0x7a   : > { %v1475_v57 = vadd.f32 %v2157_v54, %v1460_v32  ;;  %v1111_v58 = vrot.slane %v1081_v36, 1  ;;  %v1112_v59 = vrot.slane %v1082_v39, 1  ;;  %v1114_v63 = vrot.slane %v1083_v41, 1 }
  0x7b   : > { %v1476_v0 = vadd.f32 %v2157_v54, %v1461_v45  ;;  %v1171_v2 = vrot.slane %v1141_v49, 2  ;;  %v1172_v56 = vrot.slane %v1142_v52, 2  ;;  %v1174_v1 = vrot.slane %v1143_v53, 2 }
  0x7c   : > { %v1483_v33 = vmax.f32 %v1475_v57, 0.0  ;;  %v1113_v3 = vsel %vm533_vm1, %v1111_v58, %v1112_v59  ;;  %v1115_v37 = vsel %vm533_vm1, %v1112_v59, %v1114_v63  ;;  %v1198_v43 = vmul.f32 %v2026_v15, %v2427_v50 }
  0x7d   : > { %v1484_v29 = vmax.f32 %v1476_v0, 0.0  ;;  %v1130_v55 = vadd.f32 %v1113_v3, %v1070_v17  ;;  %v1131_v4 = vadd.f32 %v1115_v37, %v1071_v30  ;;  %v1173_v6 = vsel %vm598_vm2, %v1171_v2, %v1172_v56 }
  0x7e   : > { %v1175_v28 = vsel %vm598_vm2, %v1172_v56, %v1174_v1  ;;  %v1199_v5 = vmul.f32 %v2026_v15, %v2431_v7  ;;  %v1217_v47 = vmul.f32 %v2028_v16, %v2427_v50  ;;  %v1218_v34 = vmul.f32 %v2028_v16, %v2431_v7 }
  0x7f   : > { %v1489_v44 = vpack.c.bf16 %v1484_v29, %v1483_v33  ;;  %v1190_v38 = vadd.f32 %v1173_v6, %v1130_v55  ;;  %v1191_v8 = vadd.f32 %v1175_v28, %v1131_v4  ;;  %v1219_v9 = vmul.f32 %v2028_v16, %v2447_v46 }
  0x80   : > { %v1247_v10 = vrot.slane %v1217_v47, 1  ;;  %v1248_v11 = vrot.slane %v1218_v34, 1  ;;  %v1277_v19 = vmul.f32 %v2034_v20, %v2427_v50  ;;  %v1278_v24 = vmul.f32 %v2034_v20, %v2431_v7 }
  0x81   : > { %1817 = vmatprep.mubr.msk.bf16.mxu1 %vm966_vm3, %v1489_v44  ;;  %v1206_v61 = vadd.f32 %v1198_v43, %v1190_v38  ;;  %v1207_v26 = vadd.f32 %v1199_v5, %v1191_v8  ;;  %v1250_v17 = vrot.slane %v1219_v9, 1  ;;  %v1279_v30 = vmul.f32 %v2034_v20, %v2447_v46 }
  0x82   : > { %v1249_v32 = vsel %vm533_vm1, %v1247_v10, %v1248_v11  ;;  %v1307_v36 = vrot.slane %v1277_v19, 2  ;;  %v1308_v39 = vrot.slane %v1278_v24, 2  ;;  %v1334_v41 = vmul.f32 %v2036_v21, %v2465_v18 }
  0x83   : > { %v1251_v50 = vsel %vm533_vm1, %v1248_v11, %v1250_v17  ;;  %v1266_v45 = vadd.f32 %v1249_v32, %v1206_v61  ;;  %v1310_v49 = vrot.slane %v1279_v30, 2  ;;  %v1335_v7 = vmul.f32 %v2036_v21, %v2469_v25 }
  0x84   : > { %v1267_v52 = vadd.f32 %v1251_v50, %v1207_v26  ;;  %v1309_v53 = vsel %vm598_vm2, %v1307_v36, %v1308_v39  ;;  %v1353_v46 = vmul.f32 %v2038_v22, %v2465_v18  ;;  %v1354_v57 = vmul.f32 %v2038_v22, %v2469_v25 }
  0x85   : > { %v1311_v58 = vsel %vm598_vm2, %v1308_v39, %v1310_v49  ;;  %v1326_v59 = vadd.f32 %v1309_v53, %v1266_v45  ;;  %v1355_v63 = vmul.f32 %v2038_v22, %v2471_v27  ;;  %v1413_v0 = vmul.f32 %v2040_v23, %v2465_v18 }
  0x86   : > { %v1327_v2 = vadd.f32 %v1311_v58, %v1267_v52  ;;  %v1383_v56 = vrot.slane %v1353_v46, 1  ;;  %v1384_v1 = vrot.slane %v1354_v57, 1  ;;  %v1414_v33 = vmul.f32 %v2040_v23, %v2469_v25 }
  0x87   : > { %v1342_v3 = vadd.f32 %v1334_v41, %v1326_v59  ;;  %v1386_v37 = vrot.slane %v1355_v63, 1  ;;  %v1415_v43 = vmul.f32 %v2040_v23, %v2471_v27  ;;  %v1443_v29 = vrot.slane %v1413_v0, 2 }
  0x88   : > { %v1343_v55 = vadd.f32 %v1335_v7, %v1327_v2  ;;  %v1385_v4 = vsel %vm533_vm1, %v1383_v56, %v1384_v1  ;;  %v1444_v6 = vrot.slane %v1414_v33, 2  ;;  %v501_v28 = vmul.f32 %v2015_v12, %v2286_v40 }
  0x89   : > { %v1387_v18 = vsel %vm533_vm1, %v1384_v1, %v1386_v37  ;;  %v1402_v5 = vadd.f32 %v1385_v4, %v1342_v3  ;;  %v1446_v47 = vrot.slane %v1415_v43, 2  ;;  %v502_v25 = vmul.f32 %v2015_v12, %v2291_v48 }
  0x8a   : > { %v1403_v34 = vadd.f32 %v1387_v18, %v1343_v55  ;;  %v1445_v44 = vsel %vm598_vm2, %v1443_v29, %v1444_v6  ;;  %v515_v27 = vmul.f32 %v2017_v13, %v2286_v40  ;;  %v516_v38 = vmul.f32 %v2017_v13, %v2291_v48  ;;  %v2576_v55 = vld [vmem:[%s2024_s10 + $0x48] sm:$0xff]  ;;  %v2583_v18 = vld [vmem:[%s2024_s10 + $0x50] sm:$0xff] }
  0x8b   : > { %v1447_v8 = vsel %vm598_vm2, %v1444_v6, %v1446_v47  ;;  %v1462_v9 = vadd.f32 %v1445_v44, %v1402_v5  ;;  %v580_v10 = vmul.f32 %v2019_v14, %v2286_v40  ;;  %v581_v11 = vmul.f32 %v2019_v14, %v2291_v48 }
  0x8c   : > { %v1463_v19 = vadd.f32 %v1447_v8, %v1403_v34  ;;  %v544_v24 = vrot.slane %v515_v27, 1  ;;  %v545_v61 = vrot.slane %v516_v38, 1  ;;  %v582_v26 = vmul.f32 %v2019_v14, %v2241_v35  ;;  %v2593_v8 = vld [vmem:[%s2024_s10 + $0x58] sm:$0x3] }
  0x8d   : > { %v1477_v17 = vadd.f32 %v2157_v54, %v1462_v9  ;;  %v609_v30 = vrot.slane %v580_v10, 2  ;;  %v610_v32 = vrot.slane %v581_v11, 2  ;;  %v643_v36 = vmul.f32 %v2026_v15, %v2351_v31 }
  0x8e   : > { %v1478_v39 = vadd.f32 %v2157_v54, %v1463_v19  ;;  %v546_v40 = vsel %vm533_vm1, %v544_v24, %v545_v61  ;;  %v548_v48 = vsel %vm533_vm1, %v545_v61, %v547_v62  ;;  %v612_v41 = vrot.slane %v582_v26, 2 }
  0x8f   : > { %v1485_v50 = vmax.f32 %v1477_v17, 0.0  ;;  %v566_v45 = vadd.f32 %v546_v40, %v501_v28  ;;  %v567_v49 = vadd.f32 %v548_v48, %v502_v25  ;;  %v611_v35 = vsel %vm598_vm2, %v609_v30, %v610_v32 }
  0x90   : > { %v1486_v7 = vmax.f32 %v1478_v39, 0.0  ;;  %v613_v52 = vsel %vm598_vm2, %v610_v32, %v612_v41  ;;  %v644_v53 = vmul.f32 %v2026_v15, %v2357_v42  ;;  %v665_v46 = vmul.f32 %v2028_v16, %v2351_v31 }
  0x91   : > { %v631_v57 = vadd.f32 %v611_v35, %v566_v45  ;;  %v632_v51 = vadd.f32 %v613_v52, %v567_v49  ;;  %v666_v62 = vmul.f32 %v2028_v16, %v2357_v42  ;;  %v667_v58 = vmul.f32 %v2028_v16, %v2366_v60 }
  0x92   : > { %v1490_v59 = vpack.c.bf16 %v1486_v7, %v1485_v50  ;;  %v693_v63 = vrot.slane %v665_v46, 1  ;;  %v729_v0 = vmul.f32 %v2034_v20, %v2351_v31  ;;  %v730_v2 = vmul.f32 %v2034_v20, %v2357_v42 }
  0x93   : > { %v651_v56 = vadd.f32 %v643_v36, %v631_v57  ;;  %v652_v1 = vadd.f32 %v644_v53, %v632_v51  ;;  %v694_v33 = vrot.slane %v666_v62, 1  ;;  %v696_v3 = vrot.slane %v667_v58, 1 }
  0x94   : > { %1818 = vmatmul.mubr.msk.bf16.gmra.mrb[4].mxu1 %vm966_vm3, %v1490_v59  ;;  %v731_v37 = vmul.f32 %v2034_v20, %v2366_v60  ;;  %v757_v43 = vrot.slane %v729_v0, 2  ;;  %v758_v29 = vrot.slane %v730_v2, 2  ;;  %v791_v4 = vmul.f32 %v2576_v55, %v2036_v21 }
  0x95   : > { %v695_v6 = vsel %vm533_vm1, %v693_v63, %v694_v33  ;;  %v697_v28 = vsel %vm533_vm1, %v694_v33, %v696_v3  ;;  %v792_v5 = vmul.f32 %v2583_v18, %v2036_v21  ;;  %v813_v47 = vmul.f32 %v2576_v55, %v2038_v22 }
  0x96   : > { %v715_v25 = vadd.f32 %v695_v6, %v651_v56  ;;  %v716_v34 = vadd.f32 %v697_v28, %v652_v1  ;;  %v759_v44 = vsel %vm598_vm2, %v757_v43, %v758_v29  ;;  %v760_v27 = vrot.slane %v731_v37, 2 }
  0x97   : > { %v814_v38 = vmul.f32 %v2583_v18, %v2038_v22  ;;  %v815_v9 = vmul.f32 %v2593_v8, %v2038_v22  ;;  %v841_v10 = vrot.slane %v813_v47, 1  ;;  %v877_v11 = vmul.f32 %v2576_v55, %v2040_v23 }
  0x98   : > { %v761_v19 = vsel %vm598_vm2, %v758_v29, %v760_v27  ;;  %v779_v24 = vadd.f32 %v759_v44, %v715_v25  ;;  %v878_v61 = vmul.f32 %v2583_v18, %v2040_v23  ;;  %v879_v26 = vmul.f32 %v2593_v8, %v2040_v23 }
  0x99   : > { %v780_v17 = vadd.f32 %v761_v19, %v716_v34  ;;  %v842_v30 = vrot.slane %v814_v38, 1  ;;  %v844_v32 = vrot.slane %v815_v9, 1  ;;  %v905_v36 = vrot.slane %v877_v11, 2 }
  0x9a   : > { %v799_v39 = vadd.f32 %v791_v4, %v779_v24  ;;  %v906_v40 = vrot.slane %v878_v61, 2  ;;  %v908_v48 = vrot.slane %v879_v26, 2  ;;  %v503_v41 = vmul.f32 %v2015_v12, %v2351_v31 }
  0x9b   : > { %v800_v50 = vadd.f32 %v792_v5, %v780_v17  ;;  %v843_v45 = vsel %vm533_vm1, %v841_v10, %v842_v30  ;;  %v845_v49 = vsel %vm533_vm1, %v842_v30, %v844_v32  ;;  %v504_v35 = vmul.f32 %v2015_v12, %v2357_v42  ;;  %v1871_v32 = vld [vmem:[%s2024_s10 + $0x60] sm:$0xff] }
  0x9c   : > { %v863_v7 = vadd.f32 %v843_v45, %v799_v39  ;;  %v907_v52 = vsel %vm598_vm2, %v905_v36, %v906_v40  ;;  %v909_v53 = vsel %vm598_vm2, %v906_v40, %v908_v48  ;;  %v518_v46 = vmul.f32 %v2017_v13, %v2351_v31  ;;  %v1872_v48 = vld [vmem:[%s2024_s10 + $0x68] sm:$0xff] }
  0x9d   : > { %v864_v57 = vadd.f32 %v845_v49, %v800_v50  ;;  %v519_v51 = vmul.f32 %v2017_v13, %v2357_v42  ;;  %v520_v62 = vmul.f32 %v2017_v13, %v2366_v60  ;;  %v583_v58 = vmul.f32 %v2019_v14, %v2351_v31  ;;  %v2630_v31 = vld [vmem:[%s2718_s4] ss:$0 sm:$0xff] }
  0x9e   : > { %v927_v59 = vadd.f32 %v907_v52, %v863_v7  ;;  %v549_v12 = vrot.slane %v518_v46, 1  ;;  %v584_v63 = vmul.f32 %v2019_v14, %v2357_v42  ;;  %v585_v0 = vmul.f32 %v2019_v14, %v2366_v60  ;;  %v1873_v7 = vld [vmem:[%s2024_s10 + $0x70] sm:$0x3] }
  0x9f   : > { %v928_v2 = vadd.f32 %v909_v53, %v864_v57  ;;  %v550_v56 = vrot.slane %v519_v51, 1  ;;  %v552_v1 = vrot.slane %v520_v62, 1  ;;  %v614_v33 = vrot.slane %v583_v58, 2 }
  0xa0   : > { %v942_v3 = vadd.f32 %v2157_v54, %v927_v59  ;;  %v615_v37 = vrot.slane %v584_v63, 2  ;;  %v617_v43 = vrot.slane %v585_v0, 2  ;;  %v645_v13 = vmul.f32 %v2576_v55, %v2026_v15 }
  0xa1   : > { %v943_v42 = vadd.f32 %v2630_v31, %v928_v2  ;;  %v551_v14 = vsel %vm533_vm1, %v549_v12, %v550_v56  ;;  %v553_v60 = vsel %vm533_vm1, %v550_v56, %v552_v1  ;;  %v646_v29 = vmul.f32 %v2583_v18, %v2026_v15 }
  0xa2   : > { %v950_v54 = vmax.f32 %v942_v3, 0.0  ;;  %v568_v4 = vadd.f32 %v551_v14, %v503_v41  ;;  %v569_v6 = vadd.f32 %v553_v60, %v504_v35  ;;  %v616_v28 = vsel %vm598_vm2, %v614_v33, %v615_v37 }
  0xa3   : > { %v951_v5 = vmax.f32 %v943_v42, 0.0  ;;  %v618_v47 = vsel %vm598_vm2, %v615_v37, %v617_v43  ;;  %v668_v25 = vmul.f32 %v2576_v55, %v2028_v16  ;;  %v669_v34 = vmul.f32 %v2583_v18, %v2028_v16 }
  0xa4   : > { %v633_v44 = vadd.f32 %v616_v28, %v568_v4  ;;  %v634_v27 = vadd.f32 %v618_v47, %v569_v6  ;;  %v670_v15 = vmul.f32 %v2593_v8, %v2028_v16  ;;  %v732_v38 = vmul.f32 %v2576_v55, %v2034_v20 }
  0xa5   : > { %v956_v9 = vpack.c.bf16 %v951_v5, %v950_v54  ;;  %v698_v10 = vrot.slane %v668_v25, 1  ;;  %v699_v11 = vrot.slane %v669_v34, 1  ;;  %v733_v19 = vmul.f32 %v2583_v18, %v2034_v20  ;;  %v1774_v54 = vld [vmem:[%s2720_s6] ss:$0 sm:$0xff] }
  0xa6   : > { %v653_v24 = vadd.f32 %v645_v13, %v633_v44  ;;  %v654_v61 = vadd.f32 %v646_v29, %v634_v27  ;;  %v701_v26 = vrot.slane %v670_v15, 1  ;;  %v734_v17 = vmul.f32 %v2593_v8, %v2034_v20 }
  0xa7   : > { %1807 = vmatprep.mubr.msk.bf16.mxu0 %vm966_vm3, %v956_v9  ;;  %v700_v16 = vsel %vm533_vm1, %v698_v10, %v699_v11  ;;  %v762_v30 = vrot.slane %v732_v38, 2  ;;  %v763_v55 = vrot.slane %v733_v19, 2  ;;  %v793_v36 = vmul.f32 %v1871_v32, %v2036_v21 }
  0xa8   : > { %v702_v39 = vsel %vm533_vm1, %v699_v11, %v701_v26  ;;  %v717_v40 = vadd.f32 %v700_v16, %v653_v24  ;;  %v765_v18 = vrot.slane %v734_v17, 2  ;;  %v794_v41 = vmul.f32 %v1872_v48, %v2036_v21 }
  0xa9   : > { %v718_v50 = vadd.f32 %v702_v39, %v654_v61  ;;  %v764_v20 = vsel %vm598_vm2, %v762_v30, %v763_v55  ;;  %v816_v8 = vmul.f32 %v1871_v32, %v2038_v22  ;;  %v817_v45 = vmul.f32 %v1872_v48, %v2038_v22 }
  0xaa   : > { %v766_v49 = vsel %vm598_vm2, %v763_v55, %v765_v18  ;;  %v781_v35 = vadd.f32 %v764_v20, %v717_v40  ;;  %v818_v52 = vmul.f32 %v1873_v7, %v2038_v22  ;;  %v880_v53 = vmul.f32 %v1871_v32, %v2040_v23 }
  0xab   : > { %v782_v46 = vadd.f32 %v766_v49, %v718_v50  ;;  %v846_v57 = vrot.slane %v816_v8, 1  ;;  %v847_v51 = vrot.slane %v817_v45, 1  ;;  %v881_v21 = vmul.f32 %v1872_v48, %v2040_v23 }
  0xac   : > { %v801_v62 = vadd.f32 %v793_v36, %v781_v35  ;;  %v849_v58 = vrot.slane %v818_v52, 1  ;;  %v882_v59 = vmul.f32 %v1873_v7, %v2040_v23  ;;  %v910_v12 = vrot.slane %v880_v53, 2 }
  0xad   : > { %v802_v63 = vadd.f32 %v794_v41, %v782_v46  ;;  %v848_v0 = vsel %vm533_vm1, %v846_v57, %v847_v51  ;;  %v911_v2 = vrot.slane %v881_v21, 2 }
  0xae   : > { %v850_v56 = vsel %vm533_vm1, %v847_v51, %v849_v58  ;;  %v865_v22 = vadd.f32 %v848_v0, %v801_v62  ;;  %v913_v1 = vrot.slane %v882_v59, 2 }
  0xaf   : > { %v866_v33 = vadd.f32 %v850_v56, %v802_v63  ;;  %v912_v3 = vsel %vm598_vm2, %v910_v12, %v911_v2 }
  0xb0   : > { %v914_v37 = vsel %vm598_vm2, %v911_v2, %v913_v1  ;;  %v929_v43 = vadd.f32 %v912_v3, %v865_v22 }
  0xb1   : > { %v930_v13 = vadd.f32 %v914_v37, %v866_v33 }
  0xb2   : > { %v944_v42 = vadd.f32 %v2630_v31, %v929_v43 }
  0xb3   : > { %v945_v23 = vadd.f32 %v2630_v31, %v930_v13 }
  0xb4   : > { %v952_v14 = vmax.f32 %v944_v42, 0.0 }
  0xb5   : > { %v953_v60 = vmax.f32 %v945_v23, 0.0 }
  0xb7   : > { %v957_v29 = vpack.c.bf16 %v953_v60, %v952_v14 }
  0xb9   : > { %1808 = vmatmul.mubr.msk.bf16.gmra.mrb[4].mxu0 %vm966_vm3, %v957_v29 }
 0x11a   : > { %v1815_v4 = vpop.f32.mrb[0].mxu1 }
 0x11b   : > { %v1557_v6 = vadd.f32 %v1815_v4, %v1774_v54  ;;  %v1548_v28 = vpop.f32.mrb[1].mxu1 }
 0x11c   : > { %v1549_v31 = vadd.f32 %v1774_v54, %v1548_v28  ;;  %v1816_v5 = vpop.f32.mrb[2].mxu1 }
 0x11d   : > { %v1581_v47 = vmax.f32 %v1557_v6, 0.0  ;;  %v1560_v25 = vadd.f32 %v1816_v5, %v1774_v54  ;;  %v1551_v34 = vpop.f32.mrb[3].mxu1 }
 0x11e   : > { %v1579_v44 = vmax.f32 %v1549_v31, 0.0  ;;  %v1552_v27 = vadd.f32 %v1774_v54, %v1551_v34 }
 0x11f   : > { %1781 = vst [vmem:[%s2681_s9 + $0x50] sm:$0xff] %v1581_v47  ;;  %v1582_v15 = vmax.f32 %v1560_v25, 0.0 }
 0x120   : > { %1779 = vst [vmem:[%s2681_s9 + $0x40] sm:$0xff] %v1579_v44  ;;  %v1580_v38 = vmax.f32 %v1552_v27, 0.0 }
 0x121   : > { %1782 = vst [vmem:[%s2681_s9 + $0x58] sm:$0xff] %v1582_v15 }
 0x122   : > { %1780 = vst [vmem:[%s2681_s9 + $0x48] sm:$0xff] %v1580_v38 }
 0x141   : > { %v1805_v9 = vpop.f32.mrb[0].mxu0 }
 0x142   : > { %v1026_v10 = vadd.f32 %v1805_v9, %v1774_v54  ;;  %v1017_v11 = vpop.f32.mrb[1].mxu0 }
 0x143   : > { %v1018_v19 = vadd.f32 %v1774_v54, %v1017_v11  ;;  %v1806_v24 = vpop.f32.mrb[2].mxu0 }
 0x144   : > { %v1050_v61 = vmax.f32 %v1026_v10, 0.0  ;;  %v1029_v26 = vadd.f32 %v1806_v24, %v1774_v54  ;;  %v1020_v17 = vpop.f32.mrb[3].mxu0 }
 0x145   : > { %v1048_v16 = vmax.f32 %v1018_v19, 0.0  ;;  %v1021_v30 = vadd.f32 %v1774_v54, %v1020_v17 }
 0x146   : > { %1058 = vst [vmem:[%s2681_s9 + $0x10] sm:$0xff] %v1050_v61  ;;  %v1051_v55 = vmax.f32 %v1029_v26, 0.0 }
 0x147   : > { %1056 = vst [vmem:[%s2681_s9] sm:$0xff] %v1048_v16  ;;  %v1049_v32 = vmax.f32 %v1021_v30, 0.0 }
 0x148   : > { %1059 = vst [vmem:[%s2681_s9 + $0x18] sm:$0xff] %v1051_v55 }
 0x149   : > { %1057 = vst [vmem:[%s2681_s9 + $0x8] sm:$0xff] %v1049_v32 }
 0x167   : > { %v1819_v36 = vpop.f32.mrb[4].mxu1 }
 0x168   : > { %v1573_v39 = vadd.f32 %v1819_v36, %v1774_v54  ;;  %v1564_v40 = vpop.f32.mrb[5].mxu1 }
 0x169   : > { %v1565_v18 = vadd.f32 %v1774_v54, %v1564_v40  ;;  %v1820_v48 = vpop.f32.mrb[6].mxu1 }
 0x16a   : > { %v1585_v41 = vmax.f32 %v1573_v39, 0.0  ;;  %v1576_v50 = vadd.f32 %v1820_v48, %v1774_v54  ;;  %v1567_v20 = vpop.f32.mrb[7].mxu1 }
 0x16b   : > { %v1583_v8 = vmax.f32 %v1565_v18, 0.0  ;;  %v1568_v45 = vadd.f32 %v1774_v54, %v1567_v20 }
 0x16c   : > { %1785 = vst [vmem:[%s2681_s9 + $0x70] sm:$0xff] %v1585_v41  ;;  %v1586_v49 = vmax.f32 %v1576_v50, 0.0 }
 0x16d   : > { %1783 = vst [vmem:[%s2681_s9 + $0x60] sm:$0xff] %v1583_v8  ;;  %v1584_v35 = vmax.f32 %v1568_v45, 0.0 }
 0x16e   : > { %1786 = vst [vmem:[%s2681_s9 + $0x78] sm:$0xff] %v1586_v49 }
 0x16f   : > { %1784 = vst [vmem:[%s2681_s9 + $0x68] sm:$0xff] %v1584_v35 }
 0x18c   : > { %v1809_v7 = vpop.f32.mrb[4].mxu0 }
 0x18d   : > { %v1042_v52 = vadd.f32 %v1809_v7, %v1774_v54  ;;  %v1033_v53 = vpop.f32.mrb[5].mxu0 }
 0x18e   : > { %v1034_v46 = vadd.f32 %v1774_v54, %v1033_v53  ;;  %v1810_v57 = vpop.f32.mrb[6].mxu0 }
 0x18f   : > { %v1054_v51 = vmax.f32 %v1042_v52, 0.0  ;;  %v1045_v21 = vadd.f32 %v1810_v57, %v1774_v54  ;;  %v1036_v62 = vpop.f32.mrb[7].mxu0 }
 0x190   : > { %v1052_v58 = vmax.f32 %v1034_v46, 0.0  ;;  %v1037_v59 = vadd.f32 %v1774_v54, %v1036_v62 }
 0x191   : > { %1062 = vst [vmem:[%s2681_s9 + $0x30] sm:$0xff] %v1054_v51  ;;  %v1055_v12 = vmax.f32 %v1045_v21, 0.0 }
 0x192   : > { %1060 = vst [vmem:[%s2681_s9 + $0x20] sm:$0xff] %v1052_v58  ;;  %v1053_v63 = vmax.f32 %v1037_v59, 0.0 }
 0x193   : > { %1063 = vst [vmem:[%s2681_s9 + $0x38] sm:$0xff] %v1055_v12 }
 0x194   : > { %1061 = vst [vmem:[%s2681_s9 + $0x28] sm:$0xff] %v1053_v63 }
 0x195 PF: > { %s17_s28 = sadd.s32 1, %s1912_s28   ;;  %s2723_s24 = smov %s1904_s26 }
 0x196   : > { %p14_p12 = scmp.ge.s32.totalorder %s17_s28, 6   ;;  %s2724_s25 = smov %s1908_s27 }
 0x197   : > { %s2725_s26 = smov %s2728_s29  ;;  %s2726_s27 = smov %s2732_s30 }
 0x198   :  { %16 = sbr.rel (!%p14_p12) target bundleno = 3 (0x3), region = 85 }

</bundles_post_ra>
